<compile_context>
chip_gen: v6e
topology: v6e:2x2x1
jax: 0.10.0
libtpu: 0.0.40
codegen_flags: <defaults>
</compile_context>

<pallas_src>
from functools import partial

import numpy as np
import jax
import jax.numpy as jnp
from jax import lax
from jax.experimental import pallas as pl
from jax.experimental.pallas import tpu as pltpu

EPS = 1e-5  # nn.BatchNorm2d default eps


# ---------------------- generation-aware tiling helpers ---------------------- #

def _vmem_limit_bytes():
    """Scoped-VMEM limit: ~5/8 of physical VMEM (40 MiB on v7x, 80 MiB on v5e/v6e)."""
    try:
        cap = int(pltpu.get_tpu_info().vmem_capacity_bytes)
    except Exception:
        cap = 64 * 1024 * 1024          # conservative default: assume v7x (64 MiB / TC)
    return int(min(cap * 5 // 8, 100 * 1024 * 1024))


def _pick_row_tile(H, W, C, w_itemsize, budget_bytes):
    """Largest row tile (multiple of 8 dividing H2) whose folded working set fits."""
    H2, W2 = 2 * H, 2 * W
    wc = max(W * C, 128)                # lane-padded folded row widths
    w2c = max(W2 * C, 128)
    cands = [t for t in range(8, H2 + 1, 8) if H2 % t == 0] or [H2]
    best = cands[0]
    for t in cands:
        work = (2 * H2 * w2c * 4                              # resident conv1 act (x2 bufs)
                + 2 * H * wc * 4                              # resident folded x (x2 bufs)
                + 4 * t * w2c * 4                             # double-buffered out blocks
                + 2 * 3 * w2c * w2c * w_itemsize              # structured conv weights
                + 2 * wc * w2c * 4                            # bypass duplication matrix
                + 12 * t * w2c * 4)                           # in-kernel lhs/slices/acc
        if work <= budget_bytes:
            best = t
    return best


# ------------------------------ Pallas kernels ------------------------------ #

def conv1_fused_kernel(x_ref, sc_ref, sh_ref, w_ref, a_ref, s_ref, q_ref, lhs_ref):
    """BN1 + ReLU + nearest-upsample x2 + conv1 for one (image, row-tile) grid point.

    Folded lane layout: x rows are (W*Cin,), output rows are (W2*Cout,).  The conv,
    the column upsampling and the 'same' zero padding are absorbed into the structured
    weight w_ref[dy] of shape (W*Cin, W2*Cout); H upsampling is a sublane broadcast and
    the row halo is validity-masked.  Also emits per-tile partial sum / sum-of-squares
    of the conv output (lane-dense, per (W-position, channel)) for the BN2 statistics.
    """
    r = pl.program_id(1)
    _, TH2, W2C = a_ref.shape
    _, H, WC = x_ref.shape
    H2 = 2 * H
    TH = TH2 // 2
    r0 = r * TH2                         # first output (upsampled) row of this tile
    s0 = r * TH                          # first source row in x

    sc = sc_ref[...]                     # (1, W*Cin) per-channel BN scale, tiled over W
    sh = sh_ref[...]

    def bn_relu(v):                      # v: (k, W*Cin)
        return jnp.maximum(v * sc + sh, 0.0)

    # interior rows: BN + ReLU, then nearest row-upsample x2 (sublane broadcast)
    mid = bn_relu(x_ref[0, pl.ds(s0, TH), :])                                # (TH, WC)
    mid_up = jnp.broadcast_to(mid[:, None, :], (TH, 2, WC)).reshape(TH2, WC)

    # halo rows (upsampled rows r0-1 / r0+TH2); zero outside the image (conv zero pad)
    top_ok = (r0 > 0).astype(jnp.float32)
    bot_ok = (r0 + TH2 < H2).astype(jnp.float32)
    top = bn_relu(x_ref[0, pl.ds(jnp.maximum(s0 - 1, 0), 1), :]) * top_ok    # (1, WC)
    bot = bn_relu(x_ref[0, pl.ds(jnp.minimum(s0 + TH, H - 1), 1), :]) * bot_ok

    # assemble the (TH2+2, WC) matmul LHS with three block stores (no per-row loop)
    lhs_ref[0:1, :] = top
    lhs_ref[1:TH2 + 1, :] = mid_up
    lhs_ref[TH2 + 1:TH2 + 2, :] = bot

    # 3 dense, lane-dense MXU matmuls (one per kernel row dy); f32 accumulation
    acc = jnp.zeros((TH2, W2C), jnp.float32)
    for dy in range(3):
        acc += jnp.dot(lhs_ref[dy:dy + TH2, :].astype(w_ref.dtype), w_ref[dy],
                       preferred_element_type=jnp.float32)

    s_ref[...] = jnp.sum(acc, axis=0).reshape(1, 1, W2C)
    q_ref[...] = jnp.sum(acc * acc, axis=0).reshape(1, 1, W2C)
    a_ref[...] = acc.reshape(1, TH2, W2C).astype(a_ref.dtype)


def conv2_fused_kernel(a_ref, x_ref, sc_ref, sh_ref, w_ref, u_ref, o_ref, lhs_ref):
    """BN2 + ReLU + conv2 + nearest-upsampled bypass add for one (image, row-tile)."""
    r = pl.program_id(1)
    _, TH2, W2C = o_ref.shape
    _, H2, _ = a_ref.shape
    _, H, WC = x_ref.shape
    TH = TH2 // 2
    r0 = r * TH2

    sc = sc_ref[...]                     # (1, W2*Cout) per-channel BN scale, tiled
    sh = sh_ref[...]

    def bn_relu(v):
        return jnp.maximum(v.astype(jnp.float32) * sc + sh, 0.0)

    top_ok = (r0 > 0).astype(jnp.float32)
    bot_ok = (r0 + TH2 < H2).astype(jnp.float32)
    top = bn_relu(a_ref[0, pl.ds(jnp.maximum(r0 - 1, 0), 1), :]) * top_ok
    mid = bn_relu(a_ref[0, pl.ds(r0, TH2), :])
    bot = bn_relu(a_ref[0, pl.ds(jnp.minimum(r0 + TH2, H2 - 1), 1), :]) * bot_ok

    lhs_ref[0:1, :] = top
    lhs_ref[1:TH2 + 1, :] = mid
    lhs_ref[TH2 + 1:TH2 + 2, :] = bot

    acc = jnp.zeros((TH2, W2C), jnp.float32)
    for dy in range(3):
        acc += jnp.dot(lhs_ref[dy:dy + TH2, :].astype(w_ref.dtype), w_ref[dy],
                       preferred_element_type=jnp.float32)

    # bypass = Upsample(scale_factor=2)(x): sublane broadcast for rows, exact f32 0/1
    # duplication matmul (u_ref) for columns; added into acc before one dense store.
    xm = x_ref[0, pl.ds(r * TH, TH), :]                                      # (TH, WC)
    xup = jnp.broadcast_to(xm[:, None, :], (TH, 2, WC)).reshape(TH2, WC)
    acc += jnp.dot(xup, u_ref[...], preferred_element_type=jnp.float32)

    o_ref[...] = acc.reshape(1, TH2, W2C).astype(o_ref.dtype)


# ------------------------------ wrapper (glue) ------------------------------ #

@partial(jax.jit, static_argnames=("row_tile", "mxu"))
def residual_block_g(x_nchw, params, row_tile=None, mxu="bf16"):
    mxu_dtype = jnp.bfloat16 if mxu == "bf16" else jnp.float32

    w1, w2 = params["w1"], params["w2"]              # HWIO masked conv weights
    g1, b1, g2, b2 = params["g1"], params["b1"], params["g2"], params["b2"]

    x = jnp.transpose(x_nchw, (0, 2, 3, 1)).astype(jnp.float32)   # NCHW -> NHWC
    N, H, W, Cin = x.shape
    Cout = w1.shape[-1]
    if Cin != Cout:
        raise ValueError("bypass add requires in_channels == out_channels "
                         "(useConvAtSkipConn=False path)")
    H2, W2 = 2 * H, 2 * W
    WC, W2C = W * Cin, W2 * Cout

    vmem_limit = _vmem_limit_bytes()
    th2 = row_tile if row_tile is not None else _pick_row_tile(
        H, W, Cout, jnp.dtype(mxu_dtype).itemsize, vmem_limit // 2)
    assert H2 % th2 == 0 and th2 % 2 == 0 and (th2 % 8 == 0 or th2 == H2), th2
    ntiles = H2 // th2

    cparams = pltpu.CompilerParams(
        dimension_semantics=("parallel", "parallel"),
        vmem_limit_bytes=vmem_limit)

    # ------- BN1 batch statistics: plain XLA reduction (roofline, no extra kernel) ---
    mean1 = jnp.mean(x, axis=(0, 1, 2))
    var1 = jnp.mean((x - mean1) ** 2, axis=(0, 1, 2))             # biased, as BatchNorm2d
    scale1 = g1 * lax.rsqrt(var1 + EPS)
    shift1 = b1 - mean1 * scale1
    sc1f = jnp.tile(scale1, W).reshape(1, WC)                     # folded: lane = w*Cin+c
    sh1f = jnp.tile(shift1, W).reshape(1, WC)

    # ---- structured (block-Toeplitz) conv matrices, built once wrapper-side (XLA) ----
    # conv1 composed with column nearest-upsample x2 and 'same' zero padding:
    #   A[dy, w*Cin+c, x*Cout+o] = sum_{dx: 0<=x-1+dx<W2, (x-1+dx)//2 == w} w1[dy,dx,c,o]
    m1 = np.zeros((3, W, W2), np.float32)
    for dx in range(3):
        for xo in range(W2):
            xu = xo - 1 + dx
            if 0 <= xu < W2:
                m1[dx, xu // 2, xo] = 1.0
    A = jnp.einsum("dwx,ydco->ywcxo", jnp.asarray(m1), w1,
                   precision=lax.Precision.HIGHEST).reshape(3, WC, W2C).astype(mxu_dtype)

    # conv2 with 'same' zero padding:
    #   B[dy, xi*C+c, x*C+o] = w2[dy, dx, c, o]  where xi = x-1+dx in range
    m2 = np.zeros((3, W2, W2), np.float32)
    for dx in range(3):
        for xo in range(W2):
            xi = xo - 1 + dx
            if 0 <= xi < W2:
                m2[dx, xi, xo] = 1.0
    Bm = jnp.einsum("dix,ydco->yicxo", jnp.asarray(m2), w2,
                    precision=lax.Precision.HIGHEST).reshape(3, W2C, W2C).astype(mxu_dtype)

    # bypass column duplication (exact 0/1 matrix, kept in f32 so the residual is exact)
    u = np.zeros((W, Cin, W2, Cin), np.float32)
    for wcol in range(W):
        for c in range(Cin):
            u[wcol, c, 2 * wcol, c] = 1.0
            u[wcol, c, 2 * wcol + 1, c] = 1.0
    U = jnp.asarray(u.reshape(WC, W2C))

    xf = x.reshape(N, H, WC)                                      # folded, lane-dense

    # ----- pass 1: BN1 + ReLU + upsample x2 + conv1 (+ per-tile BN2 partial stats) ----
    a, psum, psqs = pl.pallas_call(
        conv1_fused_kernel,
        grid_spec=pltpu.PrefetchScalarGridSpec(
            num_scalar_prefetch=0,
            grid=(N, ntiles),
            in_specs=[
                pl.BlockSpec((1, H, WC), lambda n, r: (n, 0, 0)),
                pl.BlockSpec((1, WC), lambda n, r: (0, 0)),
                pl.BlockSpec((1, WC), lambda n, r: (0, 0)),
                pl.BlockSpec((3, WC, W2C), lambda n, r: (0, 0, 0)),
            ],
            out_specs=[
                pl.BlockSpec((1, th2, W2C), lambda n, r: (n, r, 0)),
                pl.BlockSpec((1, 1, W2C), lambda n, r: (n * ntiles + r, 0, 0)),
                pl.BlockSpec((1, 1, W2C), lambda n, r: (n * ntiles + r, 0, 0)),
            ],
            scratch_shapes=[pltpu.VMEM((th2 + 2, WC), jnp.float32)]),
        out_shape=(jax.ShapeDtypeStruct((N, H2, W2C), jnp.float32),
                   jax.ShapeDtypeStruct((N * ntiles, 1, W2C), jnp.float32),
                   jax.ShapeDtypeStruct((N * ntiles, 1, W2C), jnp.float32)),
        compiler_params=cparams,
        cost_estimate=pl.CostEstimate(
            flops=6 * N * H2 * WC * W2C + 6 * N * H * WC,
            transcendentals=0,
            bytes_accessed=4 * (N * H * WC + N * H2 * W2C + 2 * N * ntiles * W2C)
                           + 3 * WC * W2C * jnp.dtype(mxu_dtype).itemsize),
    )(xf, sc1f, sh1f, A)

    # BN2 batch statistics from the fused per-tile partial sums (f32 accumulation).
    # (single-pass E[x^2]-E[x]^2; adequate at these scales, noted as a known trade-off)
    cnt2 = float(N * H2 * W2)
    S = jnp.sum(psum.reshape(-1, W2, Cout), axis=(0, 1))
    Q = jnp.sum(psqs.reshape(-1, W2, Cout), axis=(0, 1))
    mean2 = S / cnt2
    var2 = jnp.maximum(Q / cnt2 - mean2 * mean2, 0.0)
    scale2 = g2 * lax.rsqrt(var2 + EPS)
    shift2 = b2 - mean2 * scale2
    sc2f = jnp.tile(scale2, W2).reshape(1, W2C)
    sh2f = jnp.tile(shift2, W2).reshape(1, W2C)

    # ----------- pass 2: BN2 + ReLU + conv2 + nearest-upsampled bypass add ------------
    out = pl.pallas_call(
        conv2_fused_kernel,
        grid_spec=pltpu.PrefetchScalarGridSpec(
            num_scalar_prefetch=0,
            grid=(N, ntiles),
            in_specs=[
                pl.BlockSpec((1, H2, W2C), lambda n, r: (n, 0, 0)),
                pl.BlockSpec((1, H, WC), lambda n, r: (n, 0, 0)),
                pl.BlockSpec((1, W2C), lambda n, r: (0, 0)),
                pl.BlockSpec((1, W2C), lambda n, r: (0, 0)),
                pl.BlockSpec((3, W2C, W2C), lambda n, r: (0, 0, 0)),
                pl.BlockSpec((WC, W2C), lambda n, r: (0, 0)),
            ],
            out_specs=pl.BlockSpec((1, th2, W2C), lambda n, r: (n, r, 0)),
            scratch_shapes=[pltpu.VMEM((th2 + 2, W2C), jnp.float32)]),
        out_shape=jax.ShapeDtypeStruct((N, H2, W2C), jnp.float32),
        compiler_params=cparams,
        cost_estimate=pl.CostEstimate(
            flops=6 * N * H2 * W2C * W2C + 2 * N * H2 * WC * W2C + 6 * N * H2 * W2C,
            transcendentals=0,
            bytes_accessed=4 * (2 * N * H2 * W2C + N * H * WC)
                           + 3 * W2C * W2C * jnp.dtype(mxu_dtype).itemsize),
    )(a, xf, sc2f, sh2f, Bm, U)

    out = out.reshape(N, H2, W2, Cout)
    return jnp.transpose(out, (0, 3, 1, 2))                      # NHWC -> NCHW


# ---------------------- deterministic parameter setup ----------------------- #

def subnet_mask(scores, sparsity):
    """GetSubnet.forward: keep top `sparsity` fraction of |scores| (1), rest 0."""
    flat = jnp.abs(scores).ravel()
    j = int((1.0 - sparsity) * flat.size)
    idx = jnp.argsort(flat)
    mask = jnp.zeros_like(flat).at[idx[j:]].set(1.0)
    return mask.reshape(scores.shape)


def make_params(key, cin, cout, sparsity=0.5):
    ks = jax.random.split(key, 8)
    std1 = (2.0 / (cin * 9)) ** 0.5   # kaiming_normal_(mode='fan_in', relu)
    std2 = (2.0 / (cout * 9)) ** 0.5
    w1_oihw = jax.random.normal(ks[0], (cout, cin, 3, 3), jnp.float32) * std1
    w2_oihw = jax.random.normal(ks[1], (cout, cout, 3, 3), jnp.float32) * std2
    s1 = jax.random.uniform(ks[2], (cout, cin, 3, 3), jnp.float32, -1.0, 1.0)
    s2 = jax.random.uniform(ks[3], (cout, cout, 3, 3), jnp.float32, -1.0, 1.0)
    w1_eff = w1_oihw * subnet_mask(s1, sparsity)   # SubnetConv: w = weight * subnet
    w2_eff = w2_oihw * subnet_mask(s2, sparsity)
    g1 = jax.random.normal(ks[4], (cin,), jnp.float32) * 0.1 + 1.0
    b1 = jax.random.normal(ks[5], (cin,), jnp.float32) * 0.1
    g2 = jax.random.normal(ks[6], (cout,), jnp.float32) * 0.1 + 1.0
    b2 = jax.random.normal(ks[7], (cout,), jnp.float32) * 0.1
    return {
        "w1_oihw": w1_eff, "w2_oihw": w2_eff,                 # for the reference
        "w1": jnp.transpose(w1_eff, (2, 3, 1, 0)),            # OIHW -> HWIO
        "w2": jnp.transpose(w2_eff, (2, 3, 1, 0)),
        "g1": g1, "b1": b1, "g2": g2, "b2": b2,
    }


# --------------------------- pure-JAX reference ----------------------------- #

def reference_nchw(x, p):
    def bn(h, g, b):
        m = h.mean(axis=(0, 2, 3), keepdims=True)
        v = ((h - m) ** 2).mean(axis=(0, 2, 3), keepdims=True)
        return (h - m) / jnp.sqrt(v + EPS) * g.reshape(1, -1, 1, 1) + b.reshape(1, -1, 1, 1)

    def up2(h):
        return jnp.repeat(jnp.repeat(h, 2, axis=2), 2, axis=3)

    def conv(h, w):
        return lax.conv_general_dilated(
            h, w, window_strides=(1, 1), padding=((1, 1), (1, 1)),
            dimension_numbers=("NCHW", "OIHW", "NCHW"),
            precision=lax.Precision.HIGHEST)

    h = jax.nn.relu(bn(x, p["g1"], p["b1"]))
    h = up2(h)
    h = conv(h, p["w1_oihw"])
    h = jax.nn.relu(bn(h, p["g2"], p["b2"]))
    h = conv(h, p["w2_oihw"])
    return h + up2(x)


if __name__ == "__main__":
    key = jax.random.PRNGKey(0)
    kx, kp = jax.random.split(key)

    # batch=2, in_channels=out_channels=4, spatial=16 (output spatial=32)
    N, C, H, W = 2, 4, 16, 16
    x = jax.random.normal(kx, (N, C, H, W), jnp.float32)          # NCHW like PyTorch
    params = make_params(kp, C, C, sparsity=0.5)

    ref = reference_nchw(x, params)

    # Strict check: f32 MXU operands, forced small row tile — exercises the multi-tile
    # grid, halo masking and the cross-tile BN2 partial-statistics reduction.
    out = jax.block_until_ready(residual_block_g(x, params, row_tile=8, mxu="f32"))
    assert out.shape == (N, C, 2 * H, 2 * W), out.shape
    np.testing.assert_allclose(np.asarray(out), np.asarray(ref), rtol=1e-3, atol=2e-3)

    # Default configuration: auto row tile + bf16 MXU operands (f32 accumulation).
    # Looser tolerance, as accepted by the perf review for the ~3x-MXU-throughput mode.
    out_bf16 = jax.block_until_ready(residual_block_g(x, params))
    np.testing.assert_allclose(np.asarray(out_bf16), np.asarray(ref),
                               rtol=5e-2, atol=1.5e-1)

    print("KERNEL_OK")
</pallas_src>

<mosaic_0001>
module attributes {stable_mosaic.version = 11 : i64} {
  func.func @conv1_fused_kernel(%arg0: i32, %arg1: i32, %arg2: memref<1x16x64xf32, #tpu.memory_space<vmem>>, %arg3: memref<1x64xf32, #tpu.memory_space<vmem>>, %arg4: memref<1x64xf32, #tpu.memory_space<vmem>>, %arg5: memref<3x64x128xf32, #tpu.memory_space<vmem>>, %arg6: memref<1x8x128xf32, #tpu.memory_space<vmem>>, %arg7: memref<1x1x128xf32, #tpu.memory_space<vmem>>, %arg8: memref<1x1x128xf32, #tpu.memory_space<vmem>>, %arg9: memref<10x64xf32, #tpu.memory_space<vmem>>) attributes {dimension_semantics = [#tpu.dimension_semantics<parallel>, #tpu.dimension_semantics<parallel>], iteration_bounds = array<i64: 2, 4>, scalar_prefetch = 0 : i64, scratch_operands = 1 : i64, tpu.core_type = #tpu.core_type<tc>, window_params = [{transform_indices = @transform_0, window_bounds = array<i64: 1, 16, 64>}, {pipeline_mode = #tpu.pipeline_mode<synchronous>, transform_indices = @transform_1, window_bounds = array<i64: 1, 64>}, {pipeline_mode = #tpu.pipeline_mode<synchronous>, transform_indices = @transform_2, window_bounds = array<i64: 1, 64>}, {pipeline_mode = #tpu.pipeline_mode<synchronous>, transform_indices = @transform_3, window_bounds = array<i64: 3, 64, 128>}, {transform_indices = @transform_4, window_bounds = array<i64: 1, 8, 128>}, {transform_indices = @transform_5, window_bounds = array<i64: 1, 1, 128>}, {transform_indices = @transform_6, window_bounds = array<i64: 1, 1, 128>}]} {
    %c8_i32 = arith.constant 8 : i32
    %0 = arith.muli %arg1, %c8_i32 : i32
    %c4_i32 = arith.constant 4 : i32
    %1 = arith.muli %arg1, %c4_i32 : i32
    %c0 = arith.constant 0 : index
    %c0_0 = arith.constant 0 : index
    %2 = vector.load %arg3[%c0, %c0_0] : memref<1x64xf32, #tpu.memory_space<vmem>>, vector<1x64xf32>
    %c0_1 = arith.constant 0 : index
    %c0_2 = arith.constant 0 : index
    %3 = vector.load %arg4[%c0_1, %c0_2] : memref<1x64xf32, #tpu.memory_space<vmem>>, vector<1x64xf32>
    %c0_3 = arith.constant 0 : index
    %4 = arith.index_cast %1 : i32 to index
    %c0_4 = arith.constant 0 : index
    %5 = vector.load %arg2[%c0_3, %4, %c0_4] : memref<1x16x64xf32, #tpu.memory_space<vmem>>, vector<1x4x64xf32>
    %6 = vector.shape_cast %5 : vector<1x4x64xf32> to vector<4x64xf32>
    %7 = vector.broadcast %2 : vector<1x64xf32> to vector<4x64xf32>
    %8 = arith.mulf %6, %7 : vector<4x64xf32>
    %9 = vector.broadcast %3 : vector<1x64xf32> to vector<4x64xf32>
    %10 = arith.addf %8, %9 : vector<4x64xf32>
    %cst = arith.constant 0.000000e+00 : f32
    %11 = vector.broadcast %cst : f32 to vector<4x64xf32>
    %12 = arith.maximumf %10, %11 : vector<4x64xf32>
    %13 = vector.shape_cast %12 : vector<4x64xf32> to vector<4x1x64xf32>
    %14 = vector.shape_cast %13 : vector<4x1x64xf32> to vector<4x1x64xf32>
    %15 = vector.broadcast %14 : vector<4x1x64xf32> to vector<4x2x64xf32>
    %16 = vector.shape_cast %15 : vector<4x2x64xf32> to vector<8x64xf32>
    %c0_i32 = arith.constant 0 : i32
    %17 = arith.cmpi sgt, %0, %c0_i32 : i32
    %18 = arith.extui %17 : i1 to i32
    %19 = arith.sitofp %18 : i32 to f32
    %c8_i32_5 = arith.constant 8 : i32
    %20 = arith.addi %0, %c8_i32_5 : i32
    %c32_i32 = arith.constant 32 : i32
    %21 = arith.cmpi slt, %20, %c32_i32 : i32
    %22 = arith.extui %21 : i1 to i32
    %23 = arith.sitofp %22 : i32 to f32
    %c1_i32 = arith.constant 1 : i32
    %24 = arith.subi %1, %c1_i32 : i32
    %c0_i32_6 = arith.constant 0 : i32
    %25 = arith.maxsi %24, %c0_i32_6 : i32
    %c0_7 = arith.constant 0 : index
    %26 = arith.index_cast %25 : i32 to index
    %c0_8 = arith.constant 0 : index
    %27 = vector.load %arg2[%c0_7, %26, %c0_8] : memref<1x16x64xf32, #tpu.memory_space<vmem>>, vector<1x1x64xf32>
    %28 = vector.shape_cast %27 : vector<1x1x64xf32> to vector<1x64xf32>
    %29 = arith.mulf %28, %2 : vector<1x64xf32>
    %30 = arith.addf %29, %3 : vector<1x64xf32>
    %cst_9 = arith.constant 0.000000e+00 : f32
    %31 = vector.broadcast %cst_9 : f32 to vector<1x64xf32>
    %32 = arith.maximumf %30, %31 : vector<1x64xf32>
    %33 = vector.broadcast %19 : f32 to vector<1x64xf32>
    %34 = arith.mulf %32, %33 : vector<1x64xf32>
    %c4_i32_10 = arith.constant 4 : i32
    %35 = arith.addi %1, %c4_i32_10 : i32
    %c15_i32 = arith.constant 15 : i32
    %36 = arith.minsi %35, %c15_i32 : i32
    %c0_11 = arith.constant 0 : index
    %37 = arith.index_cast %36 : i32 to index
    %c0_12 = arith.constant 0 : index
    %38 = vector.load %arg2[%c0_11, %37, %c0_12] : memref<1x16x64xf32, #tpu.memory_space<vmem>>, vector<1x1x64xf32>
    %39 = vector.shape_cast %38 : vector<1x1x64xf32> to vector<1x64xf32>
    %40 = arith.mulf %39, %2 : vector<1x64xf32>
    %41 = arith.addf %40, %3 : vector<1x64xf32>
    %cst_13 = arith.constant 0.000000e+00 : f32
    %42 = vector.broadcast %cst_13 : f32 to vector<1x64xf32>
    %43 = arith.maximumf %41, %42 : vector<1x64xf32>
    %44 = vector.broadcast %23 : f32 to vector<1x64xf32>
    %45 = arith.mulf %43, %44 : vector<1x64xf32>
    %c0_14 = arith.constant 0 : index
    %c0_15 = arith.constant 0 : index
    %46 = vector.load %arg9[%c0_14, %c0_15] : memref<10x64xf32, #tpu.memory_space<vmem>>, vector<1x64xf32>
    tpu.vector_store %arg9[%c0_14, %c0_15], %34 {strides = array<i32>} : memref<10x64xf32, #tpu.memory_space<vmem>>, vector<1x64xf32>,
    %c1 = arith.constant 1 : index
    %c0_16 = arith.constant 0 : index
    %47 = vector.load %arg9[%c1, %c0_16] : memref<10x64xf32, #tpu.memory_space<vmem>>, vector<8x64xf32>
    tpu.vector_store %arg9[%c1, %c0_16], %16 {strides = array<i32>} : memref<10x64xf32, #tpu.memory_space<vmem>>, vector<8x64xf32>,
    %c9 = arith.constant 9 : index
    %c0_17 = arith.constant 0 : index
    %48 = vector.load %arg9[%c9, %c0_17] : memref<10x64xf32, #tpu.memory_space<vmem>>, vector<1x64xf32>
    tpu.vector_store %arg9[%c9, %c0_17], %45 {strides = array<i32>} : memref<10x64xf32, #tpu.memory_space<vmem>>, vector<1x64xf32>,
    %cst_18 = arith.constant 0.000000e+00 : f32
    %49 = vector.broadcast %cst_18 : f32 to vector<8x128xf32>
    %c0_19 = arith.constant 0 : index
    %c0_20 = arith.constant 0 : index
    %50 = vector.load %arg9[%c0_19, %c0_20] : memref<10x64xf32, #tpu.memory_space<vmem>>, vector<8x64xf32>
    %c0_21 = arith.constant 0 : index
    %c0_22 = arith.constant 0 : index
    %c0_23 = arith.constant 0 : index
    %51 = vector.load %arg5[%c0_21, %c0_22, %c0_23] : memref<3x64x128xf32, #tpu.memory_space<vmem>>, vector<1x64x128xf32>
    %52 = vector.shape_cast %51 : vector<1x64x128xf32> to vector<64x128xf32>
    %cst_24 = arith.constant dense<0.000000e+00> : vector<8x128xf32>
    %53 = tpu.matmul %50, %52, %cst_24 {dimension_numbers = #tpu.dot_dimension_numbers<[1], [0], [0], [1], [0, 0, 1, 1], [], []>} : vector<8x64xf32>, vector<64x128xf32>, vector<8x128xf32> -> vector<8x128xf32>
    %54 = arith.addf %49, %53 : vector<8x128xf32>
    %c1_25 = arith.constant 1 : index
    %c0_26 = arith.constant 0 : index
    %55 = vector.load %arg9[%c1_25, %c0_26] : memref<10x64xf32, #tpu.memory_space<vmem>>, vector<8x64xf32>
    %c1_27 = arith.constant 1 : index
    %c0_28 = arith.constant 0 : index
    %c0_29 = arith.constant 0 : index
    %56 = vector.load %arg5[%c1_27, %c0_28, %c0_29] : memref<3x64x128xf32, #tpu.memory_space<vmem>>, vector<1x64x128xf32>
    %57 = vector.shape_cast %56 : vector<1x64x128xf32> to vector<64x128xf32>
    %cst_30 = arith.constant dense<0.000000e+00> : vector<8x128xf32>
    %58 = tpu.matmul %55, %57, %cst_30 {dimension_numbers = #tpu.dot_dimension_numbers<[1], [0], [0], [1], [0, 0, 1, 1], [], []>} : vector<8x64xf32>, vector<64x128xf32>, vector<8x128xf32> -> vector<8x128xf32>
    %59 = arith.addf %54, %58 : vector<8x128xf32>
    %c2 = arith.constant 2 : index
    %c0_31 = arith.constant 0 : index
    %60 = vector.load %arg9[%c2, %c0_31] : memref<10x64xf32, #tpu.memory_space<vmem>>, vector<8x64xf32>
    %c2_32 = arith.constant 2 : index
    %c0_33 = arith.constant 0 : index
    %c0_34 = arith.constant 0 : index
    %61 = vector.load %arg5[%c2_32, %c0_33, %c0_34] : memref<3x64x128xf32, #tpu.memory_space<vmem>>, vector<1x64x128xf32>
    %62 = vector.shape_cast %61 : vector<1x64x128xf32> to vector<64x128xf32>
    %cst_35 = arith.constant dense<0.000000e+00> : vector<8x128xf32>
    %63 = tpu.matmul %60, %62, %cst_35 {dimension_numbers = #tpu.dot_dimension_numbers<[1], [0], [0], [1], [0, 0, 1, 1], [], []>} : vector<8x64xf32>, vector<64x128xf32>, vector<8x128xf32> -> vector<8x128xf32>
    %64 = arith.addf %59, %63 : vector<8x128xf32>
    %cst_36 = arith.constant dense<0.000000e+00> : vector<128xf32>
    %65 = vector.multi_reduction <add>, %64, %cst_36 [0] : vector<8x128xf32> to vector<128xf32>
    %66 = vector.shape_cast %65 : vector<128xf32> to vector<1x1x128xf32>
    %c0_37 = arith.constant 0 : index
    %c0_38 = arith.constant 0 : index
    %c0_39 = arith.constant 0 : index
    %67 = vector.load %arg7[%c0_37, %c0_38, %c0_39] : memref<1x1x128xf32, #tpu.memory_space<vmem>>, vector<1x1x128xf32>
    tpu.vector_store %arg7[%c0_37, %c0_38, %c0_39], %66 {strides = array<i32>} : memref<1x1x128xf32, #tpu.memory_space<vmem>>, vector<1x1x128xf32>,
    %68 = arith.mulf %64, %64 : vector<8x128xf32>
    %cst_40 = arith.constant dense<0.000000e+00> : vector<128xf32>
    %69 = vector.multi_reduction <add>, %68, %cst_40 [0] : vector<8x128xf32> to vector<128xf32>
    %70 = vector.shape_cast %69 : vector<128xf32> to vector<1x1x128xf32>
    %c0_41 = arith.constant 0 : index
    %c0_42 = arith.constant 0 : index
    %c0_43 = arith.constant 0 : index
    %71 = vector.load %arg8[%c0_41, %c0_42, %c0_43] : memref<1x1x128xf32, #tpu.memory_space<vmem>>, vector<1x1x128xf32>
    tpu.vector_store %arg8[%c0_41, %c0_42, %c0_43], %70 {strides = array<i32>} : memref<1x1x128xf32, #tpu.memory_space<vmem>>, vector<1x1x128xf32>,
    %72 = vector.shape_cast %64 : vector<8x128xf32> to vector<1x8x128xf32>
    %c0_44 = arith.constant 0 : index
    %c0_45 = arith.constant 0 : index
    %c0_46 = arith.constant 0 : index
    %73 = vector.load %arg6[%c0_44, %c0_45, %c0_46] : memref<1x8x128xf32, #tpu.memory_space<vmem>>, vector<1x8x128xf32>
    tpu.vector_store %arg6[%c0_44, %c0_45, %c0_46], %72 {strides = array<i32>} : memref<1x8x128xf32, #tpu.memory_space<vmem>>, vector<1x8x128xf32>,
    return
  }
  func.func @transform_0(%arg0: i32, %arg1: i32) -> (i32, i32, i32) {
    %c0_i32 = arith.constant 0 : i32
    %c0_i32_0 = arith.constant 0 : i32
    %c0_i32_1 = arith.constant 0 : i32
    return %arg0, %c0_i32, %c0_i32_0 : i32, i32, i32
  }
  func.func @transform_1(%arg0: i32, %arg1: i32) -> (i32, i32) {
    %c0_i32 = arith.constant 0 : i32
    %c0_i32_0 = arith.constant 0 : i32
    %c0_i32_1 = arith.constant 0 : i32
    return %c0_i32, %c0_i32_0 : i32, i32
  }
  func.func @transform_2(%arg0: i32, %arg1: i32) -> (i32, i32) {
    %c0_i32 = arith.constant 0 : i32
    %c0_i32_0 = arith.constant 0 : i32
    %c0_i32_1 = arith.constant 0 : i32
    return %c0_i32, %c0_i32_0 : i32, i32
  }
  func.func @transform_3(%arg0: i32, %arg1: i32) -> (i32, i32, i32) {
    %c0_i32 = arith.constant 0 : i32
    %c0_i32_0 = arith.constant 0 : i32
    %c0_i32_1 = arith.constant 0 : i32
    %c0_i32_2 = arith.constant 0 : i32
    return %c0_i32, %c0_i32_0, %c0_i32_1 : i32, i32, i32
  }
  func.func @transform_4(%arg0: i32, %arg1: i32) -> (i32, i32, i32) {
    %c0_i32 = arith.constant 0 : i32
    %c0_i32_0 = arith.constant 0 : i32
    return %arg0, %arg1, %c0_i32 : i32, i32, i32
  }
  func.func @transform_5(%arg0: i32, %arg1: i32) -> (i32, i32, i32) {
    %c4_i32 = arith.constant 4 : i32
    %0 = arith.muli %arg0, %c4_i32 : i32
    %1 = arith.addi %0, %arg1 : i32
    %c0_i32 = arith.constant 0 : i32
    %c0_i32_0 = arith.constant 0 : i32
    %c0_i32_1 = arith.constant 0 : i32
    return %1, %c0_i32, %c0_i32_0 : i32, i32, i32
  }
  func.func @transform_6(%arg0: i32, %arg1: i32) -> (i32, i32, i32) {
    %c4_i32 = arith.constant 4 : i32
    %0 = arith.muli %arg0, %c4_i32 : i32
    %1 = arith.addi %0, %arg1 : i32
    %c0_i32 = arith.constant 0 : i32
    %c0_i32_0 = arith.constant 0 : i32
    %c0_i32_1 = arith.constant 0 : i32
    return %1, %c0_i32, %c0_i32_0 : i32, i32, i32
  }
}

module attributes {stable_mosaic.version = 11 : i64} {
  func.func @conv2_fused_kernel(%arg0: i32, %arg1: i32, %arg2: memref<1x32x128xf32, #tpu.memory_space<vmem>>, %arg3: memref<1x16x64xf32, #tpu.memory_space<vmem>>, %arg4: memref<1x128xf32, #tpu.memory_space<vmem>>, %arg5: memref<1x128xf32, #tpu.memory_space<vmem>>, %arg6: memref<3x128x128xf32, #tpu.memory_space<vmem>>, %arg7: memref<64x128xf32, #tpu.memory_space<vmem>>, %arg8: memref<1x8x128xf32, #tpu.memory_space<vmem>>, %arg9: memref<10x128xf32, #tpu.memory_space<vmem>>) attributes {dimension_semantics = [#tpu.dimension_semantics<parallel>, #tpu.dimension_semantics<parallel>], iteration_bounds = array<i64: 2, 4>, scalar_prefetch = 0 : i64, scratch_operands = 1 : i64, tpu.core_type = #tpu.core_type<tc>, window_params = [{transform_indices = @transform_0, window_bounds = array<i64: 1, 32, 128>}, {transform_indices = @transform_1, window_bounds = array<i64: 1, 16, 64>}, {pipeline_mode = #tpu.pipeline_mode<synchronous>, transform_indices = @transform_2, window_bounds = array<i64: 1, 128>}, {pipeline_mode = #tpu.pipeline_mode<synchronous>, transform_indices = @transform_3, window_bounds = array<i64: 1, 128>}, {pipeline_mode = #tpu.pipeline_mode<synchronous>, transform_indices = @transform_4, window_bounds = array<i64: 3, 128, 128>}, {pipeline_mode = #tpu.pipeline_mode<synchronous>, transform_indices = @transform_5, window_bounds = array<i64: 64, 128>}, {transform_indices = @transform_6, window_bounds = array<i64: 1, 8, 128>}]} {
    %c8_i32 = arith.constant 8 : i32
    %0 = arith.muli %arg1, %c8_i32 : i32
    %c0 = arith.constant 0 : index
    %c0_0 = arith.constant 0 : index
    %1 = vector.load %arg4[%c0, %c0_0] : memref<1x128xf32, #tpu.memory_space<vmem>>, vector<1x128xf32>
    %c0_1 = arith.constant 0 : index
    %c0_2 = arith.constant 0 : index
    %2 = vector.load %arg5[%c0_1, %c0_2] : memref<1x128xf32, #tpu.memory_space<vmem>>, vector<1x128xf32>
    %c0_i32 = arith.constant 0 : i32
    %3 = arith.cmpi sgt, %0, %c0_i32 : i32
    %4 = arith.extui %3 : i1 to i32
    %5 = arith.sitofp %4 : i32 to f32
    %c8_i32_3 = arith.constant 8 : i32
    %6 = arith.addi %0, %c8_i32_3 : i32
    %c32_i32 = arith.constant 32 : i32
    %7 = arith.cmpi slt, %6, %c32_i32 : i32
    %8 = arith.extui %7 : i1 to i32
    %9 = arith.sitofp %8 : i32 to f32
    %c1_i32 = arith.constant 1 : i32
    %10 = arith.subi %0, %c1_i32 : i32
    %c0_i32_4 = arith.constant 0 : i32
    %11 = arith.maxsi %10, %c0_i32_4 : i32
    %c0_5 = arith.constant 0 : index
    %12 = arith.index_cast %11 : i32 to index
    %c0_6 = arith.constant 0 : index
    %13 = vector.load %arg2[%c0_5, %12, %c0_6] : memref<1x32x128xf32, #tpu.memory_space<vmem>>, vector<1x1x128xf32>
    %14 = vector.shape_cast %13 : vector<1x1x128xf32> to vector<1x128xf32>
    %15 = arith.mulf %14, %1 : vector<1x128xf32>
    %16 = arith.addf %15, %2 : vector<1x128xf32>
    %cst = arith.constant 0.000000e+00 : f32
    %17 = vector.broadcast %cst : f32 to vector<1x128xf32>
    %18 = arith.maximumf %16, %17 : vector<1x128xf32>
    %19 = vector.broadcast %5 : f32 to vector<1x128xf32>
    %20 = arith.mulf %18, %19 : vector<1x128xf32>
    %c0_7 = arith.constant 0 : index
    %21 = arith.index_cast %0 : i32 to index
    %c0_8 = arith.constant 0 : index
    %22 = vector.load %arg2[%c0_7, %21, %c0_8] : memref<1x32x128xf32, #tpu.memory_space<vmem>>, vector<1x8x128xf32>
    %23 = vector.shape_cast %22 : vector<1x8x128xf32> to vector<8x128xf32>
    %24 = vector.broadcast %1 : vector<1x128xf32> to vector<8x128xf32>
    %25 = arith.mulf %23, %24 : vector<8x128xf32>
    %26 = vector.broadcast %2 : vector<1x128xf32> to vector<8x128xf32>
    %27 = arith.addf %25, %26 : vector<8x128xf32>
    %cst_9 = arith.constant 0.000000e+00 : f32
    %28 = vector.broadcast %cst_9 : f32 to vector<8x128xf32>
    %29 = arith.maximumf %27, %28 : vector<8x128xf32>
    %c8_i32_10 = arith.constant 8 : i32
    %30 = arith.addi %0, %c8_i32_10 : i32
    %c31_i32 = arith.constant 31 : i32
    %31 = arith.minsi %30, %c31_i32 : i32
    %c0_11 = arith.constant 0 : index
    %32 = arith.index_cast %31 : i32 to index
    %c0_12 = arith.constant 0 : index
    %33 = vector.load %arg2[%c0_11, %32, %c0_12] : memref<1x32x128xf32, #tpu.memory_space<vmem>>, vector<1x1x128xf32>
    %34 = vector.shape_cast %33 : vector<1x1x128xf32> to vector<1x128xf32>
    %35 = arith.mulf %34, %1 : vector<1x128xf32>
    %36 = arith.addf %35, %2 : vector<1x128xf32>
    %cst_13 = arith.constant 0.000000e+00 : f32
    %37 = vector.broadcast %cst_13 : f32 to vector<1x128xf32>
    %38 = arith.maximumf %36, %37 : vector<1x128xf32>
    %39 = vector.broadcast %9 : f32 to vector<1x128xf32>
    %40 = arith.mulf %38, %39 : vector<1x128xf32>
    %c0_14 = arith.constant 0 : index
    %c0_15 = arith.constant 0 : index
    %41 = vector.load %arg9[%c0_14, %c0_15] : memref<10x128xf32, #tpu.memory_space<vmem>>, vector<1x128xf32>
    tpu.vector_store %arg9[%c0_14, %c0_15], %20 {strides = array<i32>} : memref<10x128xf32, #tpu.memory_space<vmem>>, vector<1x128xf32>,
    %c1 = arith.constant 1 : index
    %c0_16 = arith.constant 0 : index
    %42 = vector.load %arg9[%c1, %c0_16] : memref<10x128xf32, #tpu.memory_space<vmem>>, vector<8x128xf32>
    tpu.vector_store %arg9[%c1, %c0_16], %29 {strides = array<i32>} : memref<10x128xf32, #tpu.memory_space<vmem>>, vector<8x128xf32>,
    %c9 = arith.constant 9 : index
    %c0_17 = arith.constant 0 : index
    %43 = vector.load %arg9[%c9, %c0_17] : memref<10x128xf32, #tpu.memory_space<vmem>>, vector<1x128xf32>
    tpu.vector_store %arg9[%c9, %c0_17], %40 {strides = array<i32>} : memref<10x128xf32, #tpu.memory_space<vmem>>, vector<1x128xf32>,
    %cst_18 = arith.constant 0.000000e+00 : f32
    %44 = vector.broadcast %cst_18 : f32 to vector<8x128xf32>
    %c0_19 = arith.constant 0 : index
    %c0_20 = arith.constant 0 : index
    %45 = vector.load %arg9[%c0_19, %c0_20] : memref<10x128xf32, #tpu.memory_space<vmem>>, vector<8x128xf32>
    %c0_21 = arith.constant 0 : index
    %c0_22 = arith.constant 0 : index
    %c0_23 = arith.constant 0 : index
    %46 = vector.load %arg6[%c0_21, %c0_22, %c0_23] : memref<3x128x128xf32, #tpu.memory_space<vmem>>, vector<1x128x128xf32>
    %47 = vector.shape_cast %46 : vector<1x128x128xf32> to vector<128x128xf32>
    %cst_24 = arith.constant dense<0.000000e+00> : vector<8x128xf32>
    %48 = tpu.matmul %45, %47, %cst_24 {dimension_numbers = #tpu.dot_dimension_numbers<[1], [0], [0], [1], [0, 0, 1, 1], [], []>} : vector<8x128xf32>, vector<128x128xf32>, vector<8x128xf32> -> vector<8x128xf32>
    %49 = arith.addf %44, %48 : vector<8x128xf32>
    %c1_25 = arith.constant 1 : index
    %c0_26 = arith.constant 0 : index
    %50 = vector.load %arg9[%c1_25, %c0_26] : memref<10x128xf32, #tpu.memory_space<vmem>>, vector<8x128xf32>
    %c1_27 = arith.constant 1 : index
    %c0_28 = arith.constant 0 : index
    %c0_29 = arith.constant 0 : index
    %51 = vector.load %arg6[%c1_27, %c0_28, %c0_29] : memref<3x128x128xf32, #tpu.memory_space<vmem>>, vector<1x128x128xf32>
    %52 = vector.shape_cast %51 : vector<1x128x128xf32> to vector<128x128xf32>
    %cst_30 = arith.constant dense<0.000000e+00> : vector<8x128xf32>
    %53 = tpu.matmul %50, %52, %cst_30 {dimension_numbers = #tpu.dot_dimension_numbers<[1], [0], [0], [1], [0, 0, 1, 1], [], []>} : vector<8x128xf32>, vector<128x128xf32>, vector<8x128xf32> -> vector<8x128xf32>
    %54 = arith.addf %49, %53 : vector<8x128xf32>
    %c2 = arith.constant 2 : index
    %c0_31 = arith.constant 0 : index
    %55 = vector.load %arg9[%c2, %c0_31] : memref<10x128xf32, #tpu.memory_space<vmem>>, vector<8x128xf32>
    %c2_32 = arith.constant 2 : index
    %c0_33 = arith.constant 0 : index
    %c0_34 = arith.constant 0 : index
    %56 = vector.load %arg6[%c2_32, %c0_33, %c0_34] : memref<3x128x128xf32, #tpu.memory_space<vmem>>, vector<1x128x128xf32>
    %57 = vector.shape_cast %56 : vector<1x128x128xf32> to vector<128x128xf32>
    %cst_35 = arith.constant dense<0.000000e+00> : vector<8x128xf32>
    %58 = tpu.matmul %55, %57, %cst_35 {dimension_numbers = #tpu.dot_dimension_numbers<[1], [0], [0], [1], [0, 0, 1, 1], [], []>} : vector<8x128xf32>, vector<128x128xf32>, vector<8x128xf32> -> vector<8x128xf32>
    %59 = arith.addf %54, %58 : vector<8x128xf32>
    %c4_i32 = arith.constant 4 : i32
    %60 = arith.muli %arg1, %c4_i32 : i32
    %c0_36 = arith.constant 0 : index
    %61 = arith.index_cast %60 : i32 to index
    %c0_37 = arith.constant 0 : index
    %62 = vector.load %arg3[%c0_36, %61, %c0_37] : memref<1x16x64xf32, #tpu.memory_space<vmem>>, vector<1x4x64xf32>
    %63 = vector.shape_cast %62 : vector<1x4x64xf32> to vector<4x64xf32>
    %64 = vector.shape_cast %63 : vector<4x64xf32> to vector<4x1x64xf32>
    %65 = vector.shape_cast %64 : vector<4x1x64xf32> to vector<4x1x64xf32>
    %66 = vector.broadcast %65 : vector<4x1x64xf32> to vector<4x2x64xf32>
    %67 = vector.shape_cast %66 : vector<4x2x64xf32> to vector<8x64xf32>
    %c0_38 = arith.constant 0 : index
    %c0_39 = arith.constant 0 : index
    %68 = vector.load %arg7[%c0_38, %c0_39] : memref<64x128xf32, #tpu.memory_space<vmem>>, vector<64x128xf32>
    %cst_40 = arith.constant dense<0.000000e+00> : vector<8x128xf32>
    %69 = tpu.matmul %67, %68, %cst_40 {dimension_numbers = #tpu.dot_dimension_numbers<[1], [0], [0], [1], [0, 0, 1, 1], [], []>} : vector<8x64xf32>, vector<64x128xf32>, vector<8x128xf32> -> vector<8x128xf32>
    %70 = arith.addf %59, %69 : vector<8x128xf32>
    %71 = vector.shape_cast %70 : vector<8x128xf32> to vector<1x8x128xf32>
    %c0_41 = arith.constant 0 : index
    %c0_42 = arith.constant 0 : index
    %c0_43 = arith.constant 0 : index
    %72 = vector.load %arg8[%c0_41, %c0_42, %c0_43] : memref<1x8x128xf32, #tpu.memory_space<vmem>>, vector<1x8x128xf32>
    tpu.vector_store %arg8[%c0_41, %c0_42, %c0_43], %71 {strides = array<i32>} : memref<1x8x128xf32, #tpu.memory_space<vmem>>, vector<1x8x128xf32>,
    return
  }
  func.func @transform_0(%arg0: i32, %arg1: i32) -> (i32, i32, i32) {
    %c0_i32 = arith.constant 0 : i32
    %c0_i32_0 = arith.constant 0 : i32
    %c0_i32_1 = arith.constant 0 : i32
    return %arg0, %c0_i32, %c0_i32_0 : i32, i32, i32
  }
  func.func @transform_1(%arg0: i32, %arg1: i32) -> (i32, i32, i32) {
    %c0_i32 = arith.constant 0 : i32
    %c0_i32_0 = arith.constant 0 : i32
    %c0_i32_1 = arith.constant 0 : i32
    return %arg0, %c0_i32, %c0_i32_0 : i32, i32, i32
  }
  func.func @transform_2(%arg0: i32, %arg1: i32) -> (i32, i32) {
    %c0_i32 = arith.constant 0 : i32
    %c0_i32_0 = arith.constant 0 : i32
    %c0_i32_1 = arith.constant 0 : i32
    return %c0_i32, %c0_i32_0 : i32, i32
  }
  func.func @transform_3(%arg0: i32, %arg1: i32) -> (i32, i32) {
    %c0_i32 = arith.constant 0 : i32
    %c0_i32_0 = arith.constant 0 : i32
    %c0_i32_1 = arith.constant 0 : i32
    return %c0_i32, %c0_i32_0 : i32, i32
  }
  func.func @transform_4(%arg0: i32, %arg1: i32) -> (i32, i32, i32) {
    %c0_i32 = arith.constant 0 : i32
    %c0_i32_0 = arith.constant 0 : i32
    %c0_i32_1 = arith.constant 0 : i32
    %c0_i32_2 = arith.constant 0 : i32
    return %c0_i32, %c0_i32_0, %c0_i32_1 : i32, i32, i32
  }
  func.func @transform_5(%arg0: i32, %arg1: i32) -> (i32, i32) {
    %c0_i32 = arith.constant 0 : i32
    %c0_i32_0 = arith.constant 0 : i32
    %c0_i32_1 = arith.constant 0 : i32
    return %c0_i32, %c0_i32_0 : i32, i32
  }
  func.func @transform_6(%arg0: i32, %arg1: i32) -> (i32, i32, i32) {
    %c0_i32 = arith.constant 0 : i32
    %c0_i32_0 = arith.constant 0 : i32
    return %arg0, %arg1, %c0_i32 : i32, i32, i32
  }
}

</mosaic_0001>

<bundles_post_ra>
// kernel: tile.28
= control target key start
LH: loop header
LB: loop body
LE: loop exit
PB: predicated region body
PF: predicated region fallthrough
CT: control target
= control target key end

     0   :  { %s28_s0 = inlined_call_operand.vmem [shape: f32[4], index: 0, kind: input, shape index: {}]   ;;  %s29_s1 = inlined_call_operand.vmem [shape: f32[16,4], index: 1, kind: output, shape index: {}]  }
   0x1   :  { %v4_v0 = vld [vmem:[%s28_s0] ss:$0 sm:$0xff] }
   0x2   :  { %5 = vst [vmem:[%s29_s1] sm:$0xff] %v4_v0  ;;  %8 = vst [vmem:[%s29_s1 + $0x8] sm:$0xff] %v4_v0 }

// kernel: tile.29
= control target key start
LH: loop header
LB: loop body
LE: loop exit
PB: predicated region body
PF: predicated region fallthrough
CT: control target
= control target key end

     0   :  { %s133_s10 = smov 60   ;;  %s134_s11 = smov 52   ;;  %vm3_vm0 = vcmask 31744   ;;  %vm9_vm1 = vcmask 523744   ;;  %vm15_vm2 = vcmask 490944   ;;  %vm21_vm3 = vcmask 458144   ;;  %s209_s0 = inlined_call_operand.vmem [shape: f32[16,4], index: 0, kind: input, shape index: {}]   ;;  %s210_s1 = inlined_call_operand.vmem [shape: f32[1,64], index: 1, kind: output, shape index: {}]  }
   0x1   :  { %v103_v0 = vld [vmem:[%s209_s0 + $0xf] sm:$0x1]   ;;  %v105_v1 = vld [vmem:[%s209_s0 + $0xd] sm:$0x1]   ;;  %v104_v2 = vld [vmem:[%s209_s0 + $0xe] sm:$0x1]  }
   0x2   :  { %7 = vrot.lane.b32.xlu0 %v103_v0, %s133_s10  ;;  %19 = vrot.lane.b32.xlu1 %v105_v1, %s134_s11  ;;  %v106_v3 = vld [vmem:[%s209_s0 + $0xc] sm:$0x1]   ;;  %s135_s16 = smov 56   ;;  %s136_s17 = smov 48   ;;  %v107_v4 = vld [vmem:[%s209_s0 + $0xb] sm:$0x1]  }
   0x3   :  { %v108_v5 = vld [vmem:[%s209_s0 + $0xa] sm:$0x1]   ;;  %v2_v6 = vld [vmem:[%s209_s0] sm:$0x1]   ;;  %s137_s24 = smov 44   ;;  %s138_s25 = smov 40  }
   0x4   :  { %4 = vst.msk [vmem:[#allocation0] sm:$0x1] %vm3_vm0, %v2_v6   ;;  %v109_v7 = vld [vmem:[%s209_s0 + $0x9] sm:$0x1]   ;;  %v110_v8 = vld [vmem:[%s209_s0 + $0x8] sm:$0x1]  }
   0x5   :  { %s139_s30 = smov 36   ;;  %s140_s2 = smov 32   ;;  %v111_v9 = vld [vmem:[%s209_s0 + $0x7] sm:$0x1]   ;;  %v112_v10 = vld [vmem:[%s209_s0 + $0x6] sm:$0x1]  }
   0x6   :  { %13 = vrot.lane.b32.xlu0 %v104_v2, %s135_s16  ;;  %25 = vrot.lane.b32.xlu1 %v106_v3, %s136_s17  ;;  %s141_s7 = smov 28   ;;  %s142_s8 = smov 24   ;;  %v113_v11 = vld [vmem:[%s209_s0 + $0x5] sm:$0x1]   ;;  %v114_v12 = vld [vmem:[%s209_s0 + $0x4] sm:$0x1]  }
   0x7   :  { %s143_s13 = smov 20   ;;  %s144_s14 = smov 16   ;;  %v115_v13 = vld [vmem:[%s209_s0 + $0x3] sm:$0x1]   ;;  %v116_v14 = vld [vmem:[%s209_s0 + $0x2] sm:$0x1]  }
   0x8   :  { %s145_s19 = smov 12   ;;  %s146_s20 = smov 8   ;;  %v117_v15 = vld [vmem:[%s209_s0 + $0x1] sm:$0x1]   ;;  %vm27_vm4 = vcmask 425344   ;;  %vm33_vm5 = vcmask 392544  }
   0x9   :  { %s147_s0 = smov 4   ;;  %vm39_vm6 = vcmask 359744   ;;  %vm45_vm7 = vcmask 326944   ;;  %vm51_vm8 = vcmask 294144   ;;  %vm57_vm9 = vcmask 261344  }
   0xa   :  { %31 = vrot.lane.b32.xlu0 %v107_v4, %s137_s24  ;;  %37 = vrot.lane.b32.xlu1 %v108_v5, %s138_s25  ;;  %vm63_vm10 = vcmask 228544   ;;  %vm69_vm11 = vcmask 195744   ;;  %vm75_vm12 = vcmask 162944   ;;  %vm81_vm13 = vcmask 130144  }
   0xb   :  { %vm87_vm14 = vcmask 97344   ;;  %vm93_vm15 = vcmask 64544  }
   0xe   :  { %43 = vrot.lane.b32.xlu0 %v109_v7, %s139_s30  ;;  %49 = vrot.lane.b32.xlu1 %v110_v8, %s140_s2 }
  0x12   :  { %55 = vrot.lane.b32.xlu0 %v111_v9, %s141_s7  ;;  %61 = vrot.lane.b32.xlu1 %v112_v10, %s142_s8 }
  0x16   :  { %67 = vrot.lane.b32.xlu0 %v113_v11, %s143_s13  ;;  %73 = vrot.lane.b32.xlu1 %v114_v12, %s144_s14 }
  0x1a   :  { %79 = vrot.lane.b32.xlu0 %v115_v13, %s145_s19  ;;  %85 = vrot.lane.b32.xlu1 %v116_v14, %s146_s20 }
  0x1e   :  { %91 = vrot.lane.b32.xlu0 %v117_v15, %s147_s0 }
  0x74   :  { %v8_v16 = vpop.permute.xlu0 %7   ;;  %v20_v17 = vpop.permute.xlu1 %19  }
  0x75   :  { %10 = vst.msk [vmem:[#allocation0] sm:$0x1] %vm9_vm1, %v8_v16  }
  0x78   :  { %v14_v18 = vpop.permute.xlu0 %13   ;;  %v26_v19 = vpop.permute.xlu1 %25  }
  0x79   :  { %16 = vst.msk [vmem:[#allocation0] sm:$0x1] %vm15_vm2, %v14_v18  }
  0x7a   :  { %22 = vst.msk [vmem:[#allocation0] sm:$0x1] %vm21_vm3, %v20_v17  }
  0x7b   :  { %28 = vst.msk [vmem:[#allocation0] sm:$0x1] %vm27_vm4, %v26_v19  }
  0x7c   :  { %v32_v20 = vpop.permute.xlu0 %31   ;;  %v38_v21 = vpop.permute.xlu1 %37  }
  0x7d   :  { %34 = vst.msk [vmem:[#allocation0] sm:$0x1] %vm33_vm5, %v32_v20  }
  0x7e   :  { %40 = vst.msk [vmem:[#allocation0] sm:$0x1] %vm39_vm6, %v38_v21  }
  0x80   :  { %v44_v22 = vpop.permute.xlu0 %43   ;;  %v50_v23 = vpop.permute.xlu1 %49  }
  0x81   :  { %46 = vst.msk [vmem:[#allocation0] sm:$0x1] %vm45_vm7, %v44_v22  }
  0x82   :  { %52 = vst.msk [vmem:[#allocation0] sm:$0x1] %vm51_vm8, %v50_v23  }
  0x84   :  { %v56_v24 = vpop.permute.xlu0 %55   ;;  %v62_v25 = vpop.permute.xlu1 %61  }
  0x85   :  { %58 = vst.msk [vmem:[#allocation0] sm:$0x1] %vm57_vm9, %v56_v24  }
  0x86   :  { %64 = vst.msk [vmem:[#allocation0] sm:$0x1] %vm63_vm10, %v62_v25  }
  0x88   :  { %v68_v26 = vpop.permute.xlu0 %67   ;;  %v74_v27 = vpop.permute.xlu1 %73  }
  0x89   :  { %70 = vst.msk [vmem:[#allocation0] sm:$0x1] %vm69_vm11, %v68_v26  }
  0x8a   :  { %76 = vst.msk [vmem:[#allocation0] sm:$0x1] %vm75_vm12, %v74_v27  }
  0x8c   :  { %v80_v28 = vpop.permute.xlu0 %79   ;;  %v86_v29 = vpop.permute.xlu1 %85  }
  0x8d   :  { %82 = vst.msk [vmem:[#allocation0] sm:$0x1] %vm81_vm13, %v80_v28  }
  0x8e   :  { %88 = vst.msk [vmem:[#allocation0] sm:$0x1] %vm87_vm14, %v86_v29  }
  0x90   :  { %v92_v30 = vpop.permute.xlu0 %91  }
  0x91   :  { %94 = vst.msk [vmem:[#allocation0] sm:$0x1] %vm93_vm15, %v92_v30  }
  0x98   :  { %v99_v31 = vld [vmem:[#allocation0] sm:$0x1] }
  0x99   :  { %102 = vst [vmem:[%s210_s1] sm:$0x1] %v99_v31 }

// kernel: residual_block_g.2
= control target key start
LH: loop header
LB: loop body
LE: loop exit
PB: predicated region body
PF: predicated region fallthrough
CT: control target
= control target key end

     0   :  { %s1080_s21 = smov 0   ;;  %s1082_s22 = smov 0   ;;  %s1313_s0 = inlined_call_operand.vmem [shape: f32[2,16,64], index: 0, kind: input, shape index: {}]   ;;  %s1314_s1 = inlined_call_operand.vmem [shape: f32[1,64], index: 1, kind: input, shape index: {}]   ;;  %s1315_s2 = inlined_call_operand.vmem [shape: f32[1,64], index: 2, kind: input, shape index: {}]   ;;  %s1316_s3 = inlined_call_operand.vmem [shape: f32[3,64,128], index: 3, kind: input, shape index: {}]   ;;  %s1317_s4 = inlined_call_operand.vmem [shape: f32[2,32,128], index: 4, kind: output, shape index: {0}]   ;;  %s1318_s5 = inlined_call_operand.vmem [shape: f32[8,1,128], index: 5, kind: output, shape index: {1}]   ;;  %s1319_s6 = inlined_call_operand.vmem [shape: f32[8,1,128], index: 6, kind: output, shape index: {2}]  }
   0x1   :  { %s1084_s23 = smov 0   ;;  %s1086_s24 = smov 0  }
   0x2   :  { %s1088_s25 = smov 0  }
   0x3 LB: > { %s26_s26 = sadd.s32 1, %s1031_s23  ;;  %s29_s27 = sadd.s32 1, %s1035_s24  ;;  %s1039_s25 = sphi %s1088_s25, %s17_s25   ;;  %s1035_s24 = sphi %s1086_s24, %s1324_s24   ;;  %s1031_s23 = sphi %s1084_s23, %s1323_s23   ;;  %s1027_s22 = sphi %s1082_s22, %s1322_s22   ;;  %s1023_s21 = sphi %s1080_s21, %s1321_s21  }
   0x4   : > { %p27_p0 = scmp.ge.s32.totalorder %s26_s26, 4  ;;  %p841_p1 = scmp.ge.s32.totalorder %s1039_s25, 1 }
   0x5   : > { %p239_p2 = scmp.lt.s32.totalorder %s1039_s25, 9 }
   0x6   : > { %s1326_s26 = smov (%p27_p0, %s26_s26), 0  ;;  %s1328_s27 = smov (!%p27_p0, %s29_s27), %s1035_s24 }
   0x7   : > { %p240_p3 = pnand %p841_p1, %p239_p2  ;;  %p31_p4 = scmp.ge.s32.totalorder %s1328_s27, 2 }
   0x8   : > { %p282_p5 = scmp.lt.s32.totalorder (!%p240_p3), %s1027_s22, 1  ;;  %s848_s12 = sshll.u32 (!%p240_p3), %s1023_s21, 3 }
   0x9   : > { %s1330_s27 = smov (%p31_p4, %s1328_s27), 0  ;;  %243 = sbr.rel (%p240_p3) target bundleno = 278 (0x116), region = 36 }
   0xa   : > { %s1144_s18 = sshll.u32 (!%p240_p3), %s1023_s21, 2  ;;  %p1146_p6 = scmp.gt.s32.totalorder (!%p240_p3), %s848_s12, 0 }
   0xb   : > { %s374_s30 = sadd.s32 (!%p240_p3), 8, %s848_s12  ;;  %s850_s20 = sadd.s32 (!%p240_p3), 4294967295, %s1144_s18 }
   0xc   : > { %p375_p7 = scmp.lt.s32.totalorder (!%p240_p3), %s374_s30, 32  ;;  %p379_p8 = scmp.gt.s32.totalorder (!%p240_p3), %s850_s20, 0 }
   0xd   : > { %s388_s19 = sadd.s32 (!%p240_p3), 4, %s1144_s18  ;;  %p289_p10 = scmp.lt.s32.totalorder (!%p240_p3), %s1023_s21, 3 }
   0xe   : > { %v858_v0 = vld [vmem:[%s1316_s3 + $0x78] sm:$0xff]  ;;  %v316_v2 = vlaneseq  ;;  %v1041_v3 = vmov 0.0   ;;  %v857_v4 = vld [vmem:[%s1316_s3 + $0x70] sm:$0xff]  ;;  %s1131_s13 = scalar_select %p282_p5, %s1027_s22, 1  ;;  %v856_v7 = vld [vmem:[%s1316_s3 + $0x68] sm:$0xff]  ;;  %vm1044_vm0 = vmmov 0  }
   0xf   : > { %v429_v1 = vld [vmem:[%s1316_s3 + $0x38] sm:$0xff]  ;;  %900 = vmatprep.subr.mxu0 %v1041_v3  ;;  %919 = vmatprep.subr.mxu1 %v1041_v3  ;;  %v428_v5 = vld [vmem:[%s1316_s3 + $0x30] sm:$0xff]  ;;  %v427_v8 = vld [vmem:[%s1316_s3 + $0x28] sm:$0xff]  ;;  %v1042_v11 = vmov 1966171168   ;;  %s1332_s20 = smov (!%p379_p8, %s850_s20), 0 }
  0x10   : > { %901 = vmatpush3.msra.mxu0 %v858_v0  ;;  %920 = vmatpush3.msra.mxu1 %v429_v1  ;;  %v1133_v6 = vshrl.u32 %v316_v2, 7  ;;  %v855_v9 = vld [vmem:[%s1316_s3 + $0x60] sm:$0xff]  ;;  %s872_s29 = sshll.u32 %s1131_s13, 4  ;;  %v332_v12 = vunpack.c.l.s4 %v1042_v11  ;;  %v854_v19 = vld [vmem:[%s1316_s3 + $0x58] sm:$0xff]  ;;  %v853_v23 = vld [vmem:[%s1316_s3 + $0x50] sm:$0xff]  ;;  %p389_p9 = scmp.lt.s32.totalorder %s388_s19, 15 }
  0x11   : > { %902 = vmatprep.subr.mxu0 %v1041_v3  ;;  %921 = vmatprep.subr.mxu1 %v1041_v3  ;;  %v426_v13 = vld [vmem:[%s1316_s3 + $0x20] sm:$0xff]  ;;  %s1165_s11 = scalar_lea.vmem %s1313_s0, %s872_s29  ;;  %v425_v20 = vld [vmem:[%s1316_s3 + $0x18] sm:$0xff]  ;;  %v424_v24 = vld [vmem:[%s1316_s3 + $0x10] sm:$0xff]  ;;  %v1043_v29 = vmov 1983009808   ;;  %vm398_vm1 = vcmask 516096  }
  0x12   : > { %903 = vmatpush3.msra.mxu0 %v857_v4  ;;  %922 = vmatpush3.msra.mxu1 %v428_v5  ;;  %v1155_v10 = vsub.s32 0, %v1133_v6  ;;  %v1170_v14 = vld [vmem:[%s1314_s1] sm:$0x1]  ;;  %s313_s17 = scalar_lea.vmem %s1165_s11, %s1144_s18  ;;  %v333_v18 = vunpack.c.0.s8 %v332_v12  ;;  %v852_v27 = vld [vmem:[%s1316_s3 + $0x48] sm:$0xff]  ;;  %v403_v30 = vunpack.c.l.s4 %v1043_v29  ;;  %s381_s14 = scalar_lea.vmem %s1165_s11, %s1332_s20  ;;  %vm418_vm2 = vcmask 523264   ;;  %v868_v63 = vld [vmem:[%s1316_s3 + $0xb8] sm:$0xff] }
  0x13   : > { %904 = vmatprep.subr.mxu0 %v1041_v3  ;;  %923 = vmatprep.subr.mxu1 %v1041_v3  ;;  %v1175_v15 = vld [vmem:[%s1315_s2] sm:$0x1]  ;;  %s372_s9 = scalar_select %p1146_p6, 1, 0  ;;  %v423_v28 = vld [vmem:[%s1316_s3 + $0x8] sm:$0xff]  ;;  %v867_v2 = vld [vmem:[%s1316_s3 + $0xb0] sm:$0xff] }
  0x14   : > { %905 = vmatpush3.msra.mxu0 %v856_v7  ;;  %924 = vmatpush3.msra.mxu1 %v427_v8  ;;  %v319_v16 = vrot.slane %v1170_v14, %v1155_v10  ;;  %v326_v17 = vrot.slane %v1175_v15, %v1155_v10  ;;  %v314_v21 = vld [vmem:[%s313_s17] sm:$0xf]  ;;  %s1195_s10 = scalar_select %p375_p7, 1, 0  ;;  %v336_v26 = vsub.s32 %v333_v18, %v1133_v6  ;;  %v404_v37 = vunpack.c.0.s8 %v403_v30  ;;  %v866_v4 = vld [vmem:[%s1316_s3 + $0xa8] sm:$0xff]  ;;  %v863_v7 = vld [vmem:[%s1316_s3 + $0x90] sm:$0xff] }
  0x15   : > { %906 = vmatprep.subr.mxu0 %v1041_v3  ;;  %925 = vmatprep.subr.mxu1 %v1041_v3  ;;  %v851_v32 = vld [vmem:[%s1316_s3 + $0x40] sm:$0xff]  ;;  %s1220_s8 = scvt.s32.f32 %s372_s9  ;;  %s1334_s19 = smov (!%p389_p9, %s388_s19), 15  ;;  %v862_v8 = vld [vmem:[%s1316_s3 + $0x88] sm:$0xff] }
  0x16   : > { %907 = vmatpush3.msra.mxu0 %v855_v9  ;;  %926 = vmatpush3.msra.mxu1 %v426_v13  ;;  %v321_v22 = vmul.f32 %v319_v16, %v314_v21  ;;  %v422_v33 = vld [vmem:[%s1316_s3] sm:$0xff]  ;;  %s391_s20 = scalar_lea.vmem %s1165_s11, %s1334_s19  ;;  %s377_s9 = scvt.s32.f32 %s1195_s10  ;;  %v407_v48 = vsub.s32 %v404_v37, %v1133_v6  ;;  %v864_v6 = vld [vmem:[%s1316_s3 + $0x98] sm:$0xff] }
  0x17   : > { %908 = vmatprep.subr.mxu0 %v1041_v3  ;;  %927 = vmatprep.subr.mxu1 %v1041_v3  ;;  %v382_v35 = vld [vmem:[%s381_s14] sm:$0x1]  ;;  %v386_v41 = vstv %s1220_s8  ;;  %s290_s11 = scalar_select %p289_p10, %s1023_s21, 3 }
  0x18   : > { %909 = vmatpush3.msra.mxu0 %v854_v19  ;;  %928 = vmatpush3.msra.mxu1 %v425_v20  ;;  %v328_v25 = vadd.f32 %v326_v17, %v321_v22  ;;  %v383_v36 = vmul.f32 %v382_v35, %v1170_v14  ;;  %v392_v42 = vld [vmem:[%s391_s20] sm:$0x1]  ;;  %v396_v54 = vstv %s377_s9  ;;  %s844_s10 = sshll.u32 %s1131_s13, 2  ;;  %s846_s30 = sshll.u32 %s1027_s22, 2 }
  0x19   : > { %910 = vmatprep.subr.mxu0 %v1041_v3  ;;  %929 = vmatprep.subr.mxu1 %v1041_v3  ;;  %v393_v46 = vmul.f32 %v392_v42, %v1170_v14  ;;  %v865_v5 = vld [vmem:[%s1316_s3 + $0xa0] sm:$0xff]  ;;  %s292_s16 = sadd.s32 %s844_s10, %s290_s11  ;;  %s296_s18 = sadd.s32 %s1023_s21, %s846_s30 }
  0x1a   : > { %911 = vmatpush3.msra.mxu0 %v853_v23  ;;  %930 = vmatpush3.msra.mxu1 %v424_v24  ;;  %v329_v31 = vmax.f32 %v328_v25, 0.0  ;;  %v384_v40 = vadd.f32 %v383_v36, %v1175_v15  ;;  %v861_v9 = vld [vmem:[%s1316_s3 + $0x80] sm:$0xff]  ;;  %s845_s19 = sshll.u32 %s292_s16, 3  ;;  %p297_p11 = scmp.lt.s32.totalorder %s296_s18, 7 }
  0x1b   : > { %912 = vmatprep.subr.mxu0 %v1041_v3  ;;  %931 = vmatprep.subr.mxu1 %v1041_v3  ;;  %v394_v52 = vadd.f32 %v393_v46, %v1175_v15  ;;  %s294_s29 = scalar_lea.vmem %s1317_s4, %s845_s19 }
  0x1c   : > { %913 = vmatpush3.msra.mxu0 %v852_v27  ;;  %932 = vmatpush3.msra.mxu1 %v423_v28  ;;  %v337_v34 = vrot.slane %v329_v31, %v336_v26  ;;  %v385_v47 = vmax.f32 %v384_v40, 0.0  ;;  %s1336_s18 = smov (!%p297_p11, %s296_s18), 7 }
  0x1d   : > { %914 = vmatprep.subr.mxu0 %v1041_v3  ;;  %933 = vmatprep.subr.mxu1 %v1041_v3  ;;  %v395_v56 = vmax.f32 %v394_v52, 0.0  ;;  %s299_s7 = scalar_lea.vmem %s1318_s5, %s1336_s18  ;;  %s306_s14 = scalar_lea.vmem %s1319_s6, %s1336_s18 }
  0x1e   : > { %915 = vmatpush3.msra.mxu0 %v851_v32  ;;  %916 = vmatprep.mubr.msk.f32.mxu0 %vm1044_vm0, %v1041_v3  ;;  %v338_v38 = vcombine.high %v337_v34, %v337_v34  ;;  %v345_v39 = vrot.slane %v337_v34, %v336_v26  ;;  %v387_v53 = vmul.f32 %v386_v41, %v385_v47 }
  0x1f   : > { %934 = vmatpush3.msra.mxu1 %v422_v33  ;;  %935 = vmatprep.mubr.msk.f32.mxu1 %vm1044_vm0, %v1041_v3  ;;  %v397_v58 = vmul.f32 %v396_v54, %v395_v56 }
  0x20   : > { %938 = vmatprep.subr.mxu0 %v1041_v3  ;;  %v352_v43 = vrot.slane %v338_v38, %v336_v26  ;;  %v353_v44 = vcombine.high %v345_v39, %v345_v39  ;;  %v358_v45 = vrot.slane %v345_v39, %v1155_v10  ;;  %399 = vst.msk [vmem:[#allocation2] sm:$0x1] %vm398_vm1, %v387_v53 }
  0x21   : > { %420 = vst.msk [vmem:[#allocation2 + $0x9] sm:$0x1] %vm398_vm1, %v397_v58 }
  0x22   : > { %v354_v49 = vcombine.high %v352_v43, %v352_v43  ;;  %v362_v50 = vrot.slane %v352_v43, %v1155_v10  ;;  %v366_v51 = vrot.slane %v353_v44, %v1155_v10 }
  0x24   : > { %v370_v55 = vrot.slane %v354_v49, %v1155_v10  ;;  %v400_v57 = vcombine.low %v358_v45, %v362_v50 }
  0x26   : > { %v401_v59 = vcombine.low %v366_v51, %v370_v55  ;;  %v408_v60 = vrot.slane %v400_v57, %v407_v48 }
  0x28   : > { %v415_v61 = vrot.slane %v401_v59, %v407_v48 }
  0x2a   : > { %v416_v62 = vcombine.low %v408_v60, %v415_v61 }
  0x2c   : > { %419 = vst.msk [vmem:[#allocation2 + $0x1] sm:$0xff] %vm418_vm2, %v416_v62 }
  0x33   : > { %v430_v0 = vld [vmem:[#allocation2 + $0x1] sm:$0xff] }
  0x34   : > { %v421_v1 = vld [vmem:[#allocation2] sm:$0xff]  ;;  %917 = vmatmul.mubr.msk.f32.vlgmr.msra.gmra.mxu0 %vm418_vm2, %v430_v0 }
  0x35   : > { %936 = vmatmul.mubr.msk.f32.vlgmr.msra.gmra.mxu1 %vm418_vm2, %v421_v1  ;;  %939 = vmatpush3.msra.mxu0 %v868_v63  ;;  %v586_v10 = vld [vmem:[#allocation2 + $0x2] sm:$0xff] }
  0x36   : > { %954 = vmatprep.mubr.msk.f32.mxu0 %vm1044_vm0, %v1041_v3  ;;  %940 = vmatprep.subr.mxu0 %v1041_v3 }
  0x37   : > { %941 = vmatpush3.msra.mxu0 %v867_v2 }
  0x38   : > { %942 = vmatprep.subr.mxu0 %v1041_v3 }
  0x39   : > { %943 = vmatpush3.msra.mxu0 %v866_v4 }
  0x3a   : > { %944 = vmatprep.subr.mxu0 %v1041_v3 }
  0x3b   : > { %945 = vmatpush3.msra.mxu0 %v865_v5 }
  0x3c   : > { %946 = vmatprep.subr.mxu0 %v1041_v3 }
  0x3d   : > { %947 = vmatpush3.msra.mxu0 %v864_v6 }
  0x3e   : > { %948 = vmatprep.subr.mxu0 %v1041_v3 }
  0x3f   : > { %949 = vmatpush3.msra.mxu0 %v863_v7 }
  0x40   : > { %950 = vmatprep.subr.mxu0 %v1041_v3 }
  0x41   : > { %951 = vmatpush3.msra.mxu0 %v862_v8 }
  0x42   : > { %952 = vmatprep.subr.mxu0 %v1041_v3 }
  0x43   : > { %953 = vmatpush3.msra.mxu0 %v861_v9 }
  0x44   : > { %955 = vmatmul.mubr.msk.f32.vlgmr.msra.gmra.mxu0 %vm418_vm2, %v586_v10 }
  0xf4   : > { %v509_v11 = vpop.f32.mrf.mxu0 }
  0xf5   : > { %v582_v12 = vpop.f32.mrf.mxu1 }
  0xf6   : > { %v918_v13 = vpop.f32.mrf.mxu0  ;;  %v583_v15 = vadd.f32 %v582_v12, %v509_v11 }
  0xf7   : > { %v937_v14 = vpop.f32.mrf.mxu1 }
 0x104   : > { %v665_v3 = vpop.f32.mrf.mxu0 }
 0x105   : > { %v669_v16 = vadd.f32 %v665_v3, %v583_v15 }
 0x106   : > { %v956_v17 = vpop.f32.mrf.mxu0 }
 0x107   : > { %v670_v18 = vrot.slane %v669_v16, 4  ;;  %v677_v19 = vmul.f32 %v669_v16, %v669_v16  ;;  %685 = vst [vmem:[%s294_s29] sm:$0xff] %v669_v16 }
 0x109   : > { %v671_v20 = vadd.f32 %v670_v18, %v669_v16  ;;  %v678_v21 = vrot.slane %v677_v19, 4 }
 0x10b   : > { %v672_v22 = vrot.slane %v671_v20, 2  ;;  %v679_v23 = vadd.f32 %v678_v21, %v677_v19 }
 0x10d   : > { %v673_v24 = vadd.f32 %v672_v22, %v671_v20  ;;  %v680_v25 = vrot.slane %v679_v23, 2 }
 0x10f   : > { %v674_v26 = vrot.slane %v673_v24, 1  ;;  %v681_v27 = vadd.f32 %v680_v25, %v679_v23 }
 0x111   : > { %v675_v28 = vadd.f32 %v674_v26, %v673_v24  ;;  %v682_v29 = vrot.slane %v681_v27, 1 }
 0x113   : > { %676 = vst [vmem:[%s299_s7] sm:$0x1] %v675_v28  ;;  %v683_v30 = vadd.f32 %v682_v29, %v681_v27 }
 0x115   : > { %684 = vst [vmem:[%s306_s14] sm:$0x1] %v683_v30 }
 0x116 PF: > { %s17_s25 = sadd.s32 1, %s1039_s25   ;;  %s1321_s21 = smov %s1031_s23 }
 0x117   : > { %p14_p12 = scmp.ge.s32.totalorder %s17_s25, 10   ;;  %s1322_s22 = smov %s1035_s24 }
 0x118   : > { %s1323_s23 = smov %s1326_s26  ;;  %s1324_s24 = smov %s1330_s27 }
 0x119   :  { %16 = sbr.rel (!%p14_p12) target bundleno = 3 (0x3), region = 95 }

// kernel: tile.38
= control target key start
LH: loop header
LB: loop body
LE: loop exit
PB: predicated region body
PF: predicated region fallthrough
CT: control target
= control target key end

     0   :  { %s40_s0 = inlined_call_operand.vmem [shape: f32[4], index: 0, kind: input, shape index: {}]   ;;  %s41_s1 = inlined_call_operand.vmem [shape: f32[32,4], index: 1, kind: output, shape index: {}]  }
   0x1   :  { %v4_v0 = vld [vmem:[%s40_s0] ss:$0 sm:$0xff] }
   0x2   :  { %5 = vst [vmem:[%s41_s1] sm:$0xff] %v4_v0  ;;  %12 = vst [vmem:[%s41_s1 + $0x8] sm:$0xff] %v4_v0 }
   0x3   :  { %13 = vst [vmem:[%s41_s1 + $0x10] sm:$0xff] %v4_v0  ;;  %14 = vst [vmem:[%s41_s1 + $0x18] sm:$0xff] %v4_v0 }

// kernel: tile.39
= control target key start
LH: loop header
LB: loop body
LE: loop exit
PB: predicated region body
PF: predicated region fallthrough
CT: control target
= control target key end

     0   :  { %s261_s10 = smov 124   ;;  %s262_s11 = smov 116   ;;  %vm3_vm0 = vcmask 31744   ;;  %vm9_vm1 = vcmask 1048544   ;;  %vm15_vm2 = vcmask 1015744   ;;  %vm21_vm3 = vcmask 982944   ;;  %s401_s0 = inlined_call_operand.vmem [shape: f32[32,4], index: 0, kind: input, shape index: {}]   ;;  %s402_s1 = inlined_call_operand.vmem [shape: f32[1,128], index: 1, kind: output, shape index: {}]  }
   0x1   :  { %v199_v0 = vld [vmem:[%s401_s0 + $0x1f] sm:$0x1]   ;;  %v201_v1 = vld [vmem:[%s401_s0 + $0x1d] sm:$0x1]   ;;  %v200_v2 = vld [vmem:[%s401_s0 + $0x1e] sm:$0x1]  }
   0x2   :  { %7 = vrot.lane.b32.xlu0 %v199_v0, %s261_s10  ;;  %19 = vrot.lane.b32.xlu1 %v201_v1, %s262_s11  ;;  %v202_v3 = vld [vmem:[%s401_s0 + $0x1c] sm:$0x1]   ;;  %s263_s16 = smov 120   ;;  %s264_s17 = smov 112   ;;  %v203_v4 = vld [vmem:[%s401_s0 + $0x1b] sm:$0x1]  }
   0x3   :  { %v204_v5 = vld [vmem:[%s401_s0 + $0x1a] sm:$0x1]   ;;  %s265_s22 = smov 108   ;;  %s266_s23 = smov 104   ;;  %v205_v6 = vld [vmem:[%s401_s0 + $0x19] sm:$0x1]  }
   0x4   :  { %v206_v7 = vld [vmem:[%s401_s0 + $0x18] sm:$0x1]   ;;  %s267_s28 = smov 100   ;;  %s268_s29 = smov 96   ;;  %v207_v8 = vld [vmem:[%s401_s0 + $0x17] sm:$0x1]  }
   0x5   :  { %v208_v9 = vld [vmem:[%s401_s0 + $0x16] sm:$0x1]   ;;  %v2_v10 = vld [vmem:[%s401_s0] sm:$0x1]   ;;  %s269_s7 = smov 92   ;;  %s270_s8 = smov 88  }
   0x6   :  { %13 = vrot.lane.b32.xlu0 %v200_v2, %s263_s16  ;;  %25 = vrot.lane.b32.xlu1 %v202_v3, %s264_s17  ;;  %4 = vst.msk [vmem:[#allocation0] sm:$0x1] %vm3_vm0, %v2_v10   ;;  %v209_v11 = vld [vmem:[%s401_s0 + $0x15] sm:$0x1]   ;;  %v210_v12 = vld [vmem:[%s401_s0 + $0x14] sm:$0x1]  }
   0x7   :  { %s271_s13 = smov 84   ;;  %s272_s14 = smov 80   ;;  %v211_v13 = vld [vmem:[%s401_s0 + $0x13] sm:$0x1]   ;;  %v212_v14 = vld [vmem:[%s401_s0 + $0x12] sm:$0x1]  }
   0x8   :  { %s273_s19 = smov 76   ;;  %s274_s20 = smov 72   ;;  %v213_v15 = vld [vmem:[%s401_s0 + $0x11] sm:$0x1]   ;;  %v214_v16 = vld [vmem:[%s401_s0 + $0x10] sm:$0x1]  }
   0x9   :  { %s275_s25 = smov 68   ;;  %s276_s26 = smov 64   ;;  %v215_v17 = vld [vmem:[%s401_s0 + $0xf] sm:$0x1]   ;;  %v216_v18 = vld [vmem:[%s401_s0 + $0xe] sm:$0x1]  }
   0xa   :  { %31 = vrot.lane.b32.xlu0 %v203_v4, %s265_s22  ;;  %37 = vrot.lane.b32.xlu1 %v204_v5, %s266_s23  ;;  %s277_s2 = smov 60   ;;  %s278_s3 = smov 56   ;;  %v217_v19 = vld [vmem:[%s401_s0 + $0xd] sm:$0x1]   ;;  %v218_v20 = vld [vmem:[%s401_s0 + $0xc] sm:$0x1]  }
   0xb   :  { %s280_s9 = smov 48   ;;  %v219_v21 = vld [vmem:[%s401_s0 + $0xb] sm:$0x1]   ;;  %v220_v22 = vld [vmem:[%s401_s0 + $0xa] sm:$0x1]   ;;  %s282_s15 = smov 40  }
   0xc   :  { %v221_v23 = vld [vmem:[%s401_s0 + $0x9] sm:$0x1]   ;;  %v222_v24 = vld [vmem:[%s401_s0 + $0x8] sm:$0x1]   ;;  %s284_s21 = smov 32   ;;  %s286_s27 = smov 24  }
   0xd   :  { %v223_v25 = vld [vmem:[%s401_s0 + $0x7] sm:$0x1]   ;;  %v224_v26 = vld [vmem:[%s401_s0 + $0x6] sm:$0x1]   ;;  %v225_v27 = vld [vmem:[%s401_s0 + $0x5] sm:$0x1]  }
   0xe   :  { %43 = vrot.lane.b32.xlu0 %v205_v6, %s267_s28  ;;  %49 = vrot.lane.b32.xlu1 %v206_v7, %s268_s29  ;;  %v226_v28 = vld [vmem:[%s401_s0 + $0x4] sm:$0x1]   ;;  %s288_s4 = smov 16   ;;  %v227_v29 = vld [vmem:[%s401_s0 + $0x3] sm:$0x1]   ;;  %s290_s10 = smov 8  }
   0xf   :  { %v228_v30 = vld [vmem:[%s401_s0 + $0x2] sm:$0x1]   ;;  %v229_v31 = vld [vmem:[%s401_s0 + $0x1] sm:$0x1]   ;;  %s291_s0 = smov 4   ;;  %vm27_vm4 = vcmask 950144  }
  0x10   :  { %vm33_vm5 = vcmask 917344   ;;  %vm39_vm6 = vcmask 884544   ;;  %vm45_vm7 = vcmask 851744   ;;  %vm51_vm8 = vcmask 818944  }
  0x11   :  { %vm57_vm9 = vcmask 786144   ;;  %vm63_vm10 = vcmask 753344   ;;  %vm69_vm11 = vcmask 720544   ;;  %vm75_vm12 = vcmask 687744  }
  0x12   :  { %55 = vrot.lane.b32.xlu0 %v207_v8, %s269_s7  ;;  %61 = vrot.lane.b32.xlu1 %v208_v9, %s270_s8  ;;  %s279_s8 = smov 52   ;;  %vm81_vm13 = vcmask 654944   ;;  %vm87_vm14 = vcmask 622144   ;;  %vm93_vm15 = vcmask 589344   ;;  %vm99_vm0 = vcmask 556544  }
  0x16   :  { %67 = vrot.lane.b32.xlu0 %v209_v11, %s271_s13  ;;  %73 = vrot.lane.b32.xlu1 %v210_v12, %s272_s14  ;;  %s281_s14 = smov 44  }
  0x1a   :  { %79 = vrot.lane.b32.xlu0 %v211_v13, %s273_s19  ;;  %85 = vrot.lane.b32.xlu1 %v212_v14, %s274_s20  ;;  %s283_s20 = smov 36  }
  0x1e   :  { %91 = vrot.lane.b32.xlu0 %v213_v15, %s275_s25  ;;  %97 = vrot.lane.b32.xlu1 %v214_v16, %s276_s26  ;;  %s285_s26 = smov 28  }
  0x22   :  { %103 = vrot.lane.b32.xlu0 %v215_v17, %s277_s2  ;;  %109 = vrot.lane.b32.xlu1 %v216_v18, %s278_s3  ;;  %s287_s3 = smov 20  }
  0x26   :  { %115 = vrot.lane.b32.xlu0 %v217_v19, %s279_s8  ;;  %121 = vrot.lane.b32.xlu1 %v218_v20, %s280_s9  ;;  %s289_s9 = smov 12  }
  0x2a   :  { %127 = vrot.lane.b32.xlu0 %v219_v21, %s281_s14  ;;  %133 = vrot.lane.b32.xlu1 %v220_v22, %s282_s15 }
  0x2e   :  { %139 = vrot.lane.b32.xlu0 %v221_v23, %s283_s20  ;;  %145 = vrot.lane.b32.xlu1 %v222_v24, %s284_s21 }
  0x32   :  { %151 = vrot.lane.b32.xlu0 %v223_v25, %s285_s26  ;;  %157 = vrot.lane.b32.xlu1 %v224_v26, %s286_s27 }
  0x36   :  { %163 = vrot.lane.b32.xlu0 %v225_v27, %s287_s3  ;;  %169 = vrot.lane.b32.xlu1 %v226_v28, %s288_s4 }
  0x3a   :  { %175 = vrot.lane.b32.xlu0 %v227_v29, %s289_s9  ;;  %181 = vrot.lane.b32.xlu1 %v228_v30, %s290_s10 }
  0x3e   :  { %187 = vrot.lane.b32.xlu0 %v229_v31, %s291_s0 }
  0x74   :  { %v8_v32 = vpop.permute.xlu0 %7   ;;  %v20_v33 = vpop.permute.xlu1 %19  }
  0x75   :  { %10 = vst.msk [vmem:[#allocation0] sm:$0x1] %vm9_vm1, %v8_v32   ;;  %vm105_vm1 = vcmask 523744  }
  0x78   :  { %v14_v34 = vpop.permute.xlu0 %13   ;;  %v26_v35 = vpop.permute.xlu1 %25  }
  0x79   :  { %16 = vst.msk [vmem:[#allocation0] sm:$0x1] %vm15_vm2, %v14_v34   ;;  %vm111_vm2 = vcmask 490944  }
  0x7a   :  { %22 = vst.msk [vmem:[#allocation0] sm:$0x1] %vm21_vm3, %v20_v33   ;;  %vm117_vm3 = vcmask 458144  }
  0x7b   :  { %28 = vst.msk [vmem:[#allocation0] sm:$0x1] %vm27_vm4, %v26_v35   ;;  %vm123_vm4 = vcmask 425344  }
  0x7c   :  { %v32_v36 = vpop.permute.xlu0 %31   ;;  %v38_v37 = vpop.permute.xlu1 %37  }
  0x7d   :  { %34 = vst.msk [vmem:[#allocation0] sm:$0x1] %vm33_vm5, %v32_v36   ;;  %vm129_vm5 = vcmask 392544  }
  0x7e   :  { %40 = vst.msk [vmem:[#allocation0] sm:$0x1] %vm39_vm6, %v38_v37   ;;  %vm135_vm6 = vcmask 359744  }
  0x80   :  { %v44_v38 = vpop.permute.xlu0 %43   ;;  %v50_v39 = vpop.permute.xlu1 %49  }
  0x81   :  { %46 = vst.msk [vmem:[#allocation0] sm:$0x1] %vm45_vm7, %v44_v38   ;;  %vm141_vm7 = vcmask 326944  }
  0x82   :  { %52 = vst.msk [vmem:[#allocation0] sm:$0x1] %vm51_vm8, %v50_v39   ;;  %vm147_vm8 = vcmask 294144  }
  0x84   :  { %v56_v40 = vpop.permute.xlu0 %55   ;;  %v62_v41 = vpop.permute.xlu1 %61  }
  0x85   :  { %58 = vst.msk [vmem:[#allocation0] sm:$0x1] %vm57_vm9, %v56_v40   ;;  %vm153_vm9 = vcmask 261344  }
  0x86   :  { %64 = vst.msk [vmem:[#allocation0] sm:$0x1] %vm63_vm10, %v62_v41   ;;  %vm159_vm10 = vcmask 228544  }
  0x88   :  { %v68_v42 = vpop.permute.xlu0 %67   ;;  %v74_v43 = vpop.permute.xlu1 %73  }
  0x89   :  { %70 = vst.msk [vmem:[#allocation0] sm:$0x1] %vm69_vm11, %v68_v42   ;;  %vm165_vm11 = vcmask 195744  }
  0x8a   :  { %76 = vst.msk [vmem:[#allocation0] sm:$0x1] %vm75_vm12, %v74_v43   ;;  %vm171_vm12 = vcmask 162944  }
  0x8c   :  { %v80_v44 = vpop.permute.xlu0 %79   ;;  %v86_v45 = vpop.permute.xlu1 %85  }
  0x8d   :  { %82 = vst.msk [vmem:[#allocation0] sm:$0x1] %vm81_vm13, %v80_v44   ;;  %vm177_vm13 = vcmask 130144  }
  0x8e   :  { %88 = vst.msk [vmem:[#allocation0] sm:$0x1] %vm87_vm14, %v86_v45   ;;  %vm183_vm14 = vcmask 97344  }
  0x90   :  { %v92_v46 = vpop.permute.xlu0 %91   ;;  %v98_v47 = vpop.permute.xlu1 %97  }
  0x91   :  { %94 = vst.msk [vmem:[#allocation0] sm:$0x1] %vm93_vm15, %v92_v46   ;;  %vm189_vm15 = vcmask 64544  }
  0x92   :  { %100 = vst.msk [vmem:[#allocation0] sm:$0x1] %vm99_vm0, %v98_v47  }
  0x94   :  { %v104_v48 = vpop.permute.xlu0 %103   ;;  %v110_v49 = vpop.permute.xlu1 %109  }
  0x95   :  { %106 = vst.msk [vmem:[#allocation0] sm:$0x1] %vm105_vm1, %v104_v48  }
  0x96   :  { %112 = vst.msk [vmem:[#allocation0] sm:$0x1] %vm111_vm2, %v110_v49  }
  0x98   :  { %v116_v50 = vpop.permute.xlu0 %115   ;;  %v122_v51 = vpop.permute.xlu1 %121  }
  0x99   :  { %118 = vst.msk [vmem:[#allocation0] sm:$0x1] %vm117_vm3, %v116_v50  }
  0x9a   :  { %124 = vst.msk [vmem:[#allocation0] sm:$0x1] %vm123_vm4, %v122_v51  }
  0x9c   :  { %v128_v52 = vpop.permute.xlu0 %127   ;;  %v134_v53 = vpop.permute.xlu1 %133  }
  0x9d   :  { %130 = vst.msk [vmem:[#allocation0] sm:$0x1] %vm129_vm5, %v128_v52  }
  0x9e   :  { %136 = vst.msk [vmem:[#allocation0] sm:$0x1] %vm135_vm6, %v134_v53  }
  0xa0   :  { %v140_v54 = vpop.permute.xlu0 %139   ;;  %v146_v55 = vpop.permute.xlu1 %145  }
  0xa1   :  { %142 = vst.msk [vmem:[#allocation0] sm:$0x1] %vm141_vm7, %v140_v54  }
  0xa2   :  { %148 = vst.msk [vmem:[#allocation0] sm:$0x1] %vm147_vm8, %v146_v55  }
  0xa4   :  { %v152_v56 = vpop.permute.xlu0 %151   ;;  %v158_v57 = vpop.permute.xlu1 %157  }
  0xa5   :  { %154 = vst.msk [vmem:[#allocation0] sm:$0x1] %vm153_vm9, %v152_v56  }
  0xa6   :  { %160 = vst.msk [vmem:[#allocation0] sm:$0x1] %vm159_vm10, %v158_v57  }
  0xa8   :  { %v164_v58 = vpop.permute.xlu0 %163   ;;  %v170_v59 = vpop.permute.xlu1 %169  }
  0xa9   :  { %166 = vst.msk [vmem:[#allocation0] sm:$0x1] %vm165_vm11, %v164_v58  }
  0xaa   :  { %172 = vst.msk [vmem:[#allocation0] sm:$0x1] %vm171_vm12, %v170_v59  }
  0xac   :  { %v176_v60 = vpop.permute.xlu0 %175   ;;  %v182_v61 = vpop.permute.xlu1 %181  }
  0xad   :  { %178 = vst.msk [vmem:[#allocation0] sm:$0x1] %vm177_vm13, %v176_v60  }
  0xae   :  { %184 = vst.msk [vmem:[#allocation0] sm:$0x1] %vm183_vm14, %v182_v61  }
  0xb0   :  { %v188_v62 = vpop.permute.xlu0 %187  }
  0xb1   :  { %190 = vst.msk [vmem:[#allocation0] sm:$0x1] %vm189_vm15, %v188_v62  }
  0xb8   :  { %v195_v63 = vld [vmem:[#allocation0] sm:$0x1] }
  0xb9   :  { %198 = vst [vmem:[%s402_s1] sm:$0x1] %v195_v63 }

// kernel: residual_block_g.3
= control target key start
LH: loop header
LB: loop body
LE: loop exit
PB: predicated region body
PF: predicated region fallthrough
CT: control target
= control target key end

     0   :  { %s1206_s21 = smov 0   ;;  %s1208_s22 = smov 0   ;;  %s1576_s0 = inlined_call_operand.vmem [shape: f32[2,32,128], index: 0, kind: input, shape index: {}]   ;;  %s1577_s1 = inlined_call_operand.vmem [shape: f32[2,16,64], index: 1, kind: input, shape index: {}]   ;;  %s1578_s2 = inlined_call_operand.vmem [shape: f32[1,128], index: 2, kind: input, shape index: {}]   ;;  %s1579_s3 = inlined_call_operand.vmem [shape: f32[1,128], index: 3, kind: input, shape index: {}]   ;;  %s1580_s4 = inlined_call_operand.vmem [shape: f32[3,128,128], index: 4, kind: input, shape index: {}]   ;;  %s1581_s5 = inlined_call_operand.vmem [shape: f32[64,128], index: 5, kind: input, shape index: {}]   ;;  %s1582_s6 = inlined_call_operand.vmem [shape: f32[2,32,128], index: 6, kind: output, shape index: {}]  }
   0x1   :  { %s1210_s23 = smov 0   ;;  %s1212_s24 = smov 0  }
   0x2   :  { %s1214_s25 = smov 0  }
   0x3 LB: > { %s25_s26 = sadd.s32 1, %s1157_s23  ;;  %s28_s27 = sadd.s32 1, %s1161_s24  ;;  %s1165_s25 = sphi %s1214_s25, %s16_s25   ;;  %s1161_s24 = sphi %s1212_s24, %s1587_s24   ;;  %s1157_s23 = sphi %s1210_s23, %s1586_s23   ;;  %s1153_s22 = sphi %s1208_s22, %s1585_s22   ;;  %s1149_s21 = sphi %s1206_s21, %s1584_s21  }
   0x4   : > { %p26_p0 = scmp.ge.s32.totalorder %s25_s26, 4  ;;  %p851_p1 = scmp.ge.s32.totalorder %s1165_s25, 1 }
   0x5   : > { %p236_p2 = scmp.lt.s32.totalorder %s1165_s25, 9 }
   0x6   : > { %s1589_s26 = smov (%p26_p0, %s25_s26), 0  ;;  %s1591_s27 = smov (!%p26_p0, %s28_s27), %s1161_s24 }
   0x7   : > { %p237_p3 = pnand %p851_p1, %p236_p2  ;;  %p30_p4 = scmp.ge.s32.totalorder %s1591_s27, 2 }
   0x8   : > { %p274_p5 = scmp.lt.s32.totalorder (!%p237_p3), %s1153_s22, 1  ;;  %s1253_s12 = sshll.u32 (!%p237_p3), %s1149_s21, 3 }
   0x9   : > { %s1593_s27 = smov (%p30_p4, %s1591_s27), 0  ;;  %240 = sbr.rel (%p237_p3) target bundleno = 278 (0x116), region = 44 }
   0xa   : > { %p295_p6 = scmp.gt.s32.totalorder (!%p237_p3), %s1253_s12, 0  ;;  %s859_s17 = sadd.s32 (!%p237_p3), 4294967295, %s1253_s12 }
   0xb   : > { %p1270_p7 = scmp.gt.s32.totalorder (!%p237_p3), %s859_s17, 0  ;;  %s1290_s11 = sadd.s32 (!%p237_p3), 8, %s1253_s12 }
   0xc   : > { %p329_p8 = scmp.lt.s32.totalorder (!%p237_p3), %s1290_s11, 31  ;;  %p299_p9 = scmp.lt.s32.totalorder (!%p237_p3), %s1290_s11, 32 }
   0xd   : > { %s892_s14 = sshll.u32 (!%p237_p3), %s1149_s21, 2  ;;  %p286_p10 = scmp.lt.s32.totalorder (!%p237_p3), %s1149_s21, 3 }
   0xe   : > { %v875_v0 = vld [vmem:[%s1580_s4 + $0xf8] sm:$0xff]  ;;  %v315_v2 = vlaneseq  ;;  %v1167_v3 = vmov 0.0   ;;  %v874_v4 = vld [vmem:[%s1580_s4 + $0xf0] sm:$0xff]  ;;  %s1595_s22 = smov (!%p274_p5, %s1153_s22), 1  ;;  %v873_v6 = vld [vmem:[%s1580_s4 + $0xe8] sm:$0xff]  ;;  %s1597_s17 = smov (!%p1270_p7, %s859_s17), 0 }
   0xf   : > { %v357_v1 = vld [vmem:[%s1580_s4 + $0x78] sm:$0xff]  ;;  %959 = vmatprep.subr.mxu0 %v1167_v3  ;;  %994 = vmatprep.subr.mxu1 %v1167_v3  ;;  %v356_v5 = vld [vmem:[%s1580_s4 + $0x70] sm:$0xff]  ;;  %v355_v7 = vld [vmem:[%s1580_s4 + $0x68] sm:$0xff]  ;;  %s897_s18 = sshll.u32 %s1595_s22, 5  ;;  %v1168_v38 = vmov 1966171168  }
  0x10   : > { %960 = vmatpush3.msra.mxu0 %v875_v0  ;;  %995 = vmatpush3.msra.mxu1 %v357_v1  ;;  %v1265_v8 = vshrl.u32 %v315_v2, 7  ;;  %v872_v9 = vld [vmem:[%s1580_s4 + $0xe0] sm:$0xff]  ;;  %s1285_s9 = scalar_lea.vmem %s1576_s0, %s897_s18  ;;  %v871_v11 = vld [vmem:[%s1580_s4 + $0xd8] sm:$0xff]  ;;  %v870_v14 = vld [vmem:[%s1580_s4 + $0xd0] sm:$0xff]  ;;  %v618_v39 = vunpack.c.l.s4 %v1168_v38  ;;  %vm1169_vm0 = vmmov 0   ;;  %vm674_vm1 = vcmask 523264  }
  0x11   : > { %961 = vmatprep.subr.mxu0 %v1167_v3  ;;  %996 = vmatprep.subr.mxu1 %v1167_v3  ;;  %v354_v10 = vld [vmem:[%s1580_s4 + $0x60] sm:$0xff]  ;;  %s312_s10 = scalar_lea.vmem %s1285_s9, %s1253_s12  ;;  %v353_v12 = vld [vmem:[%s1580_s4 + $0x58] sm:$0xff]  ;;  %v352_v15 = vld [vmem:[%s1580_s4 + $0x50] sm:$0xff]  ;;  %s305_s15 = scalar_lea.vmem %s1285_s9, %s1597_s17 }
  0x12   : > { %962 = vmatpush3.msra.mxu0 %v874_v4  ;;  %997 = vmatpush3.msra.mxu1 %v356_v5  ;;  %v1301_v13 = vsub.s32 0, %v1265_v8  ;;  %s1305_s18 = scalar_select %p295_p6, 1, 0  ;;  %v869_v16 = vld [vmem:[%s1580_s4 + $0xc8] sm:$0xff]  ;;  %v1324_v17 = vld [vmem:[%s1578_s2] sm:$0x1]  ;;  %v619_v46 = vunpack.c.0.s8 %v618_v39 }
  0x13   : > { %963 = vmatprep.subr.mxu0 %v1167_v3  ;;  %998 = vmatprep.subr.mxu1 %v1167_v3  ;;  %v1329_v18 = vld [vmem:[%s1579_s3] sm:$0x1]  ;;  %v351_v19 = vld [vmem:[%s1580_s4 + $0x48] sm:$0xff]  ;;  %s898_s12 = sshll.u32 %s1595_s22, 4  ;;  %v867_v29 = vld [vmem:[%s1580_s4 + $0xb8] sm:$0xff]  ;;  %s1599_s21 = smov (!%p286_p10, %s1149_s21), 3 }
  0x14   : > { %964 = vmatpush3.msra.mxu0 %v873_v6  ;;  %999 = vmatpush3.msra.mxu1 %v355_v7  ;;  %v313_v20 = vld [vmem:[%s312_s10] sm:$0xff]  ;;  %v318_v21 = vrot.slane %v1324_v17, %v1301_v13  ;;  %v325_v22 = vrot.slane %v1329_v18, %v1301_v13  ;;  %s297_s28 = scvt.s32.f32 %s1305_s18  ;;  %v349_v30 = vld [vmem:[%s1580_s4 + $0x38] sm:$0xff]  ;;  %v866_v34 = vld [vmem:[%s1580_s4 + $0xb0] sm:$0xff]  ;;  %s283_s30 = scalar_lea.vmem %s1577_s1, %s898_s12  ;;  %v622_v56 = vsub.s32 %v619_v46, %v1265_v8  ;;  %v1170_v7 = vmov 1983009808  }
  0x15   : > { %965 = vmatprep.subr.mxu0 %v1167_v3  ;;  %1000 = vmatprep.subr.mxu1 %v1167_v3  ;;  %v306_v23 = vld [vmem:[%s305_s15] sm:$0x1]  ;;  %s1355_s18 = scalar_select %p329_p8, %s1290_s11, 31  ;;  %v348_v35 = vld [vmem:[%s1580_s4 + $0x30] sm:$0xff]  ;;  %v865_v40 = vld [vmem:[%s1580_s4 + $0xa8] sm:$0xff] }
  0x16   : > { %966 = vmatpush3.msra.mxu0 %v872_v9  ;;  %1001 = vmatpush3.msra.mxu1 %v354_v10  ;;  %v307_v24 = vmul.f32 %v306_v23, %v1324_v17  ;;  %v868_v25 = vld [vmem:[%s1580_s4 + $0xc0] sm:$0xff]  ;;  %v320_v27 = vmul.f32 %v318_v21, %v313_v20  ;;  %v310_v32 = vstv %s297_s28  ;;  %s1372_s15 = scalar_select %p299_p9, 1, 0  ;;  %v347_v41 = vld [vmem:[%s1580_s4 + $0x28] sm:$0xff]  ;;  %v863_v47 = vld [vmem:[%s1580_s4 + $0x98] sm:$0xff]  ;;  %v660_v9 = vunpack.c.l.s4 %v1170_v7 }
  0x17   : > { %967 = vmatprep.subr.mxu0 %v1167_v3  ;;  %1002 = vmatprep.subr.mxu1 %v1167_v3  ;;  %v350_v26 = vld [vmem:[%s1580_s4 + $0x40] sm:$0xff]  ;;  %s331_s28 = scalar_lea.vmem %s1285_s9, %s1355_s18  ;;  %s606_s18 = scalar_lea.vmem %s283_s30, %s892_s14  ;;  %v345_v48 = vld [vmem:[%s1580_s4 + $0x18] sm:$0xff]  ;;  %v862_v52 = vld [vmem:[%s1580_s4 + $0x90] sm:$0xff] }
  0x18   : > { %968 = vmatpush3.msra.mxu0 %v871_v11  ;;  %1003 = vmatpush3.msra.mxu1 %v353_v12  ;;  %v308_v28 = vadd.f32 %v307_v24, %v1329_v18  ;;  %v1367_v31 = vadd.f32 %v325_v22, %v320_v27  ;;  %s301_s9 = scvt.s32.f32 %s1372_s15  ;;  %v332_v42 = vld [vmem:[%s331_s28] sm:$0x1]  ;;  %v344_v53 = vld [vmem:[%s1580_s4 + $0x10] sm:$0xff]  ;;  %v861_v57 = vld [vmem:[%s1580_s4 + $0x88] sm:$0xff]  ;;  %s856_s12 = sshll.u32 %s1595_s22, 2 }
  0x19   : > { %969 = vmatprep.subr.mxu0 %v1167_v3  ;;  %1004 = vmatprep.subr.mxu1 %v1167_v3  ;;  %v864_v43 = vld [vmem:[%s1580_s4 + $0xa0] sm:$0xff]  ;;  %v333_v45 = vmul.f32 %v332_v42, %v1324_v17  ;;  %v343_v58 = vld [vmem:[%s1580_s4 + $0x8] sm:$0xff]  ;;  %v891_v1 = vld [vmem:[%s1580_s4 + $0x178] sm:$0xff]  ;;  %s289_s16 = sadd.s32 %s856_s12, %s1599_s21 }
  0x1a   : > { %970 = vmatpush3.msra.mxu0 %v870_v14  ;;  %1005 = vmatpush3.msra.mxu1 %v352_v15  ;;  %v309_v33 = vmax.f32 %v308_v28, 0.0  ;;  %v328_v36 = vmax.f32 %v1367_v31, 0.0  ;;  %v346_v44 = vld [vmem:[%s1580_s4 + $0x20] sm:$0xff]  ;;  %v336_v51 = vstv %s301_s9  ;;  %v890_v2 = vld [vmem:[%s1580_s4 + $0x170] sm:$0xff]  ;;  %v656_v4 = vld [vmem:[%s1581_s5 + $0x38] sm:$0xff]  ;;  %s857_s20 = sshll.u32 %s289_s16, 3 }
  0x1b   : > { %971 = vmatprep.subr.mxu0 %v1167_v3  ;;  %1006 = vmatprep.subr.mxu1 %v1167_v3  ;;  %v334_v49 = vadd.f32 %v333_v45, %v1329_v18  ;;  %v893_v50 = vld.sshfl [vmem:[%s606_s18] sm:$0x33 pattern:$0x75316420]  ;;  %v889_v10 = vld [vmem:[%s1580_s4 + $0x168] sm:$0xff]  ;;  %v655_v11 = vld [vmem:[%s1581_s5 + $0x30] sm:$0xff]  ;;  %s291_s15 = scalar_lea.vmem %s1582_s6, %s857_s20 }
  0x1c   : > { %972 = vmatpush3.msra.mxu0 %v869_v16  ;;  %1007 = vmatpush3.msra.mxu1 %v351_v19  ;;  %v311_v37 = vmul.f32 %v310_v32, %v309_v33  ;;  %339 = vst [vmem:[#allocation2 + $0x1] sm:$0xff] %v328_v36  ;;  %v616_v55 = vcombine.high %v893_v50, %v893_v50  ;;  %v860_v60 = vld [vmem:[%s1580_s4 + $0x80] sm:$0xff]  ;;  %v654_v15 = vld [vmem:[%s1581_s5 + $0x28] sm:$0xff]  ;;  %v661_v19 = vunpack.c.0.s8 %v660_v9  ;;  %v887_v20 = vld [vmem:[%s1580_s4 + $0x158] sm:$0xff] }
  0x1d   : > { %973 = vmatprep.subr.mxu0 %v1167_v3  ;;  %1008 = vmatprep.subr.mxu1 %v1167_v3  ;;  %v335_v54 = vmax.f32 %v334_v49, 0.0  ;;  %v342_v61 = vld [vmem:[%s1580_s4] sm:$0xff]  ;;  %v623_v62 = vrot.slane %v893_v50, %v622_v56  ;;  %v652_v22 = vld [vmem:[%s1581_s5 + $0x18] sm:$0xff]  ;;  %v651_v27 = vld [vmem:[%s1581_s5 + $0x10] sm:$0xff] }
  0x1e   : > { %974 = vmatpush3.msra.mxu0 %v868_v25  ;;  %1009 = vmatpush3.msra.mxu1 %v350_v26  ;;  %338 = vst [vmem:[#allocation2] sm:$0x1] %v311_v37  ;;  %v630_v63 = vrot.slane %v616_v55, %v622_v56  ;;  %v888_v14 = vld [vmem:[%s1580_s4 + $0x160] sm:$0xff]  ;;  %v664_v25 = vsub.s32 %v661_v19, %v1265_v8  ;;  %v885_v26 = vld [vmem:[%s1580_s4 + $0x148] sm:$0xff]  ;;  %v883_v31 = vld [vmem:[%s1580_s4 + $0x138] sm:$0xff] }
  0x1f   : > { %975 = vmatprep.subr.mxu0 %v1167_v3  ;;  %1010 = vmatprep.subr.mxu1 %v1167_v3  ;;  %v337_v59 = vmul.f32 %v336_v51, %v335_v54  ;;  %v631_v5 = vcombine.high %v623_v62, %v623_v62  ;;  %v636_v12 = vrot.slane %v623_v62, %v1301_v13  ;;  %v653_v21 = vld [vmem:[%s1581_s5 + $0x20] sm:$0xff]  ;;  %v650_v28 = vld [vmem:[%s1581_s5 + $0x8] sm:$0xff]  ;;  %v882_v33 = vld [vmem:[%s1580_s4 + $0x130] sm:$0xff] }
  0x20   : > { %976 = vmatpush3.msra.mxu0 %v867_v29  ;;  %1011 = vmatpush3.msra.mxu1 %v349_v30  ;;  %v632_v6 = vcombine.high %v630_v63, %v630_v63  ;;  %v640_v16 = vrot.slane %v630_v63, %v1301_v13  ;;  %v884_v8 = vld [vmem:[%s1580_s4 + $0x140] sm:$0xff]  ;;  %v879_v37 = vld [vmem:[%s1580_s4 + $0x118] sm:$0xff]  ;;  %v878_v38 = vld [vmem:[%s1580_s4 + $0x110] sm:$0xff] }
  0x21   : > { %977 = vmatprep.subr.mxu0 %v1167_v3  ;;  %1012 = vmatprep.subr.mxu1 %v1167_v3  ;;  %340 = vst [vmem:[#allocation2 + $0x9] sm:$0x1] %v337_v59  ;;  %v644_v17 = vrot.slane %v631_v5, %v1301_v13  ;;  %v649_v32 = vld [vmem:[%s1581_s5] sm:$0xff]  ;;  %v877_v39 = vld [vmem:[%s1580_s4 + $0x108] sm:$0xff] }
  0x22   : > { %978 = vmatpush3.msra.mxu0 %v866_v34  ;;  %1013 = vmatpush3.msra.mxu1 %v348_v35  ;;  %v648_v18 = vrot.slane %v632_v6, %v1301_v13  ;;  %v886_v13 = vld [vmem:[%s1580_s4 + $0x150] sm:$0xff]  ;;  %v657_v23 = vcombine.low %v636_v12, %v640_v16  ;;  %v881_v35 = vld [vmem:[%s1580_s4 + $0x128] sm:$0xff] }
  0x23   : > { %979 = vmatprep.subr.mxu0 %v1167_v3  ;;  %1014 = vmatprep.subr.mxu1 %v1167_v3 }
  0x24   : > { %980 = vmatpush3.msra.mxu0 %v865_v40  ;;  %1015 = vmatpush3.msra.mxu1 %v347_v41  ;;  %v658_v24 = vcombine.low %v644_v17, %v648_v18  ;;  %v665_v29 = vrot.slane %v657_v23, %v664_v25  ;;  %v876_v40 = vld [vmem:[%s1580_s4 + $0x100] sm:$0xff] }
  0x25   : > { %981 = vmatprep.subr.mxu0 %v1167_v3  ;;  %1016 = vmatprep.subr.mxu1 %v1167_v3  ;;  %v341_v0 = vld [vmem:[#allocation2] sm:$0xff] }
  0x26   : > { %982 = vmatpush3.msra.mxu0 %v864_v43  ;;  %1017 = vmatpush3.msra.mxu1 %v346_v44  ;;  %v672_v30 = vrot.slane %v658_v24, %v664_v25 }
  0x27   : > { %983 = vmatprep.subr.mxu0 %v1167_v3  ;;  %1018 = vmatprep.subr.mxu1 %v1167_v3 }
  0x28   : > { %984 = vmatpush3.msra.mxu0 %v863_v47  ;;  %1019 = vmatpush3.msra.mxu1 %v345_v48  ;;  %v673_v34 = vcombine.low %v665_v29, %v672_v30  ;;  %v516_v41 = vld [vmem:[#allocation2 + $0x2] sm:$0xff] }
  0x29   : > { %985 = vmatprep.subr.mxu0 %v1167_v3  ;;  %1020 = vmatprep.subr.mxu1 %v1167_v3 }
  0x2a   : > { %986 = vmatpush3.msra.mxu0 %v862_v52  ;;  %1021 = vmatpush3.msra.mxu1 %v344_v53 }
  0x2b   : > { %987 = vmatprep.subr.mxu0 %v1167_v3  ;;  %1022 = vmatprep.subr.mxu1 %v1167_v3 }
  0x2c   : > { %988 = vmatpush3.msra.mxu0 %v861_v57  ;;  %1023 = vmatpush3.msra.mxu1 %v343_v58 }
  0x2d   : > { %989 = vmatprep.subr.mxu0 %v1167_v3  ;;  %991 = vmatprep.mubr.msk.f32.mxu0 %vm1169_vm0, %v1167_v3 }
  0x2e   : > { %990 = vmatpush3.msra.mxu0 %v860_v60  ;;  %1024 = vmatprep.subr.mxu1 %v1167_v3 }
  0x2f   : > { %992 = vmatmul.mubr.f32.vlgmr.msra.gmra.mxu0 %v328_v36  ;;  %1025 = vmatpush3.msra.mxu1 %v342_v61  ;;  %v880_v36 = vld [vmem:[%s1580_s4 + $0x120] sm:$0xff] }
  0x30   : > { %1026 = vmatprep.mubr.msk.f32.mxu1 %vm1169_vm0, %v1167_v3  ;;  %1029 = vmatprep.subr.mxu0 %v1167_v3 }
  0x31   : > { %1027 = vmatmul.mubr.f32.vlgmr.msra.gmra.mxu1 %v341_v0  ;;  %1030 = vmatpush3.msra.mxu0 %v891_v1 }
  0x32   : > { %1031 = vmatprep.subr.mxu0 %v1167_v3  ;;  %1064 = vmatprep.subr.mxu1 %v1167_v3 }
  0x33   : > { %1032 = vmatpush3.msra.mxu0 %v890_v2  ;;  %1065 = vmatpush3.msra.mxu1 %v656_v4 }
  0x34   : > { %1033 = vmatprep.subr.mxu0 %v1167_v3  ;;  %1066 = vmatprep.subr.mxu1 %v1167_v3 }
  0x35   : > { %1034 = vmatpush3.msra.mxu0 %v889_v10  ;;  %1067 = vmatpush3.msra.mxu1 %v655_v11 }
  0x36   : > { %1035 = vmatprep.subr.mxu0 %v1167_v3  ;;  %1068 = vmatprep.subr.mxu1 %v1167_v3 }
  0x37   : > { %1036 = vmatpush3.msra.mxu0 %v888_v14  ;;  %1069 = vmatpush3.msra.mxu1 %v654_v15 }
  0x38   : > { %1037 = vmatprep.subr.mxu0 %v1167_v3  ;;  %1070 = vmatprep.subr.mxu1 %v1167_v3 }
  0x39   : > { %1038 = vmatpush3.msra.mxu0 %v887_v20  ;;  %1071 = vmatpush3.msra.mxu1 %v653_v21 }
  0x3a   : > { %1039 = vmatprep.subr.mxu0 %v1167_v3  ;;  %1072 = vmatprep.subr.mxu1 %v1167_v3 }
  0x3b   : > { %1040 = vmatpush3.msra.mxu0 %v886_v13  ;;  %1073 = vmatpush3.msra.mxu1 %v652_v22 }
  0x3c   : > { %1041 = vmatprep.subr.mxu0 %v1167_v3  ;;  %1074 = vmatprep.subr.mxu1 %v1167_v3 }
  0x3d   : > { %1042 = vmatpush3.msra.mxu0 %v885_v26  ;;  %1075 = vmatpush3.msra.mxu1 %v651_v27 }
  0x3e   : > { %1043 = vmatprep.subr.mxu0 %v1167_v3  ;;  %1076 = vmatprep.subr.mxu1 %v1167_v3 }
  0x3f   : > { %1044 = vmatpush3.msra.mxu0 %v884_v8  ;;  %1077 = vmatpush3.msra.mxu1 %v650_v28 }
  0x40   : > { %1045 = vmatprep.subr.mxu0 %v1167_v3  ;;  %1078 = vmatprep.subr.mxu1 %v1167_v3 }
  0x41   : > { %1046 = vmatpush3.msra.mxu0 %v883_v31  ;;  %1061 = vmatprep.mubr.msk.f32.mxu0 %vm1169_vm0, %v1167_v3 }
  0x42   : > { %1047 = vmatprep.subr.mxu0 %v1167_v3  ;;  %1079 = vmatpush3.msra.mxu1 %v649_v32 }
  0x43   : > { %1048 = vmatpush3.msra.mxu0 %v882_v33  ;;  %1080 = vmatprep.mubr.msk.f32.mxu1 %vm1169_vm0, %v1167_v3 }
  0x44   : > { %1049 = vmatprep.subr.mxu0 %v1167_v3  ;;  %1081 = vmatmul.mubr.msk.f32.vlgmr.msra.gmra.mxu1 %vm674_vm1, %v673_v34 }
  0x45   : > { %1050 = vmatpush3.msra.mxu0 %v881_v35 }
  0x46   : > { %1051 = vmatprep.subr.mxu0 %v1167_v3 }
  0x47   : > { %1052 = vmatpush3.msra.mxu0 %v880_v36 }
  0x48   : > { %1053 = vmatprep.subr.mxu0 %v1167_v3 }
  0x49   : > { %1054 = vmatpush3.msra.mxu0 %v879_v37 }
  0x4a   : > { %1055 = vmatprep.subr.mxu0 %v1167_v3 }
  0x4b   : > { %1056 = vmatpush3.msra.mxu0 %v878_v38 }
  0x4c   : > { %1057 = vmatprep.subr.mxu0 %v1167_v3 }
  0x4d   : > { %1058 = vmatpush3.msra.mxu0 %v877_v39 }
  0x4e   : > { %1059 = vmatprep.subr.mxu0 %v1167_v3 }
  0x4f   : > { %1060 = vmatpush3.msra.mxu0 %v876_v40 }
  0x50   : > { %1062 = vmatmul.mubr.f32.vlgmr.msra.gmra.mxu0 %v516_v41 }
  0xef   : > { %v442_v42 = vpop.f32.mrf.mxu0 }
  0xf1   : > { %v512_v43 = vpop.f32.mrf.mxu1  ;;  %v993_v44 = vpop.f32.mrf.mxu0 }
  0xf2   : > { %v513_v48 = vadd.f32 %v512_v43, %v442_v42 }
  0xf3   : > { %v1028_v45 = vpop.f32.mrf.mxu1 }
 0x104   : > { %v743_v46 = vpop.f32.mrf.mxu1 }
 0x106   : > { %v1082_v47 = vpop.f32.mrf.mxu1 }
 0x110   : > { %v600_v49 = vpop.f32.mrf.mxu0 }
 0x111   : > { %v604_v50 = vadd.f32 %v600_v49, %v513_v48 }
 0x112   : > { %v1063_v3 = vpop.f32.mrf.mxu0 }
 0x113   : > { %v747_v51 = vadd.f32 %v743_v46, %v604_v50 }
 0x115   : > { %748 = vst [vmem:[%s291_s15] sm:$0xff] %v747_v51 }
 0x116 PF: > { %s16_s25 = sadd.s32 1, %s1165_s25   ;;  %s1584_s21 = smov %s1157_s23 }
 0x117   : > { %p13_p11 = scmp.ge.s32.totalorder %s16_s25, 10   ;;  %s1585_s22 = smov %s1161_s24 }
 0x118   : > { %s1586_s23 = smov %s1589_s26  ;;  %s1587_s24 = smov %s1593_s27 }
 0x119   :  { %15 = sbr.rel (!%p13_p11) target bundleno = 3 (0x3), region = 83 }

</bundles_post_ra>
